<compile_context>
chip_gen: v7x
topology: tpu7x:2x2x1
jax: 0.10.0
libtpu: 0.0.40
codegen_flags: <defaults>
</compile_context>

<pallas_src>
import functools

import jax
import jax.numpy as jnp
from jax.experimental import pallas as pl
from jax.experimental.pallas import tpu as pltpu


# -----------------------------------------------------------------------------
# Fused Pallas kernel
# -----------------------------------------------------------------------------
def _fused_kernel(conv_w_ref, conv_b_ref, x_ref, feat_ref,
                  gamma_ref, beta_ref, w1_ref, b1_ref, w2_ref, b2_ref,
                  out_ref, *, n_signals, channel_n, kernel_size, n_tasks,
                  n_classes):
    """Whole forward pass in a single kernel body.

    conv_w: (S*C*K,) SMEM    conv_b: (S*C,) SMEM
    x:      (S, B, L) VMEM   feat:   (B, F) VMEM
    gamma/beta: (T, D)       w1: (T, D, 50)  b1: (T, 50)
    w2: (T, n_classes, 50)   b2: (T, n_classes)
    out: (B, out_pad >= 128) lane-dense slab; task t / class c at column t*nc+c.
    """
    S, C, K = n_signals, channel_n, kernel_size
    x_all = x_ref[...].astype(jnp.float32)          # (S, B, L)
    B = x_all.shape[1]
    L = x_all.shape[2]
    Tout = L - K + 1
    inv_tout = 1.0 / float(Tout)

    # ---- per-signal Conv1d(1->C, K) + ReLU + global average pool (VPU) ----
    pooled_cols = []
    for s in range(S):
        x_s = x_all[s]                              # (B, L)
        shifted = [x_s[:, k:k + Tout] for k in range(K)]   # K static slices
        for c in range(C):
            base = s * C * K + c * K
            acc = shifted[0] * conv_w_ref[base]
            for k in range(1, K):
                acc = acc + shifted[k] * conv_w_ref[base + k]
            acc = acc + conv_b_ref[s * C + c]
            acc = jnp.maximum(acc, 0.0)             # ReLU
            # global average pool over time (lane reduce)
            pooled_cols.append(jnp.sum(acc, axis=1, keepdims=True) * inv_tout)
    feat_cnn = jnp.concatenate(pooled_cols, axis=1)            # (B, S*C)

    # ---- loop-invariant concat with hand-crafted features ----
    x_cat = jnp.concatenate(
        [feat_cnn, feat_ref[...].astype(jnp.float32)], axis=1)  # (B, D)

    # ---- shared BatchNorm1d statistics (training mode, biased variance) ----
    mean = jnp.mean(x_cat, axis=0, keepdims=True)
    var = jnp.mean((x_cat - mean) ** 2, axis=0, keepdims=True)
    xn_base = (x_cat - mean) * jax.lax.rsqrt(var + 1e-5)        # (B, D)

    gamma_all = gamma_ref[...]
    beta_all = beta_ref[...]
    b1_all = b1_ref[...]
    b2_all = b2_ref[...]

    # ---- per-task regression heads ----
    head_cols = []
    for t in range(n_tasks):
        xn = xn_base * gamma_all[t:t + 1, :] + beta_all[t:t + 1, :]
        h = jnp.maximum(xn, 0.0)                                 # ReLU
        w1_t = w1_ref[t]                                         # (D, 50)
        h1 = jnp.dot(h, w1_t, preferred_element_type=jnp.float32)
        h1 = h1 + b1_all[t:t + 1, :]                             # (B, 50)
        w2_t = w2_ref[t]                                         # (nc, 50)
        for c in range(n_classes):
            # fc2 as VPU multiply + lane reduce (avoid 1-lane MXU matmul)
            col = jnp.sum(h1 * w2_t[c:c + 1, :], axis=1, keepdims=True)
            col = col + b2_all[t:t + 1, c:c + 1]
            head_cols.append(col)                                # (B, 1)
    heads = jnp.concatenate(head_cols, axis=1)                   # (B, T*nc)

    pad = out_ref.shape[1] - heads.shape[1]
    if pad > 0:
        heads = jnp.concatenate(
            [heads, jnp.zeros((B, pad), jnp.float32)], axis=1)
    out_ref[...] = heads.astype(out_ref.dtype)                   # lane-dense store


# -----------------------------------------------------------------------------
# Wrapper
# -----------------------------------------------------------------------------
def resp_multiverse_forward(x, feature, params, config):
    """Forward pass of resp_multiverse (late fusion).

    x:       (B, num_inputs, L)   -- PyTorch NCL layout
    feature: (B, N_features) or (B, N_features, T)
    """
    tasks = config["tasks"]
    C = config["channel_n"]
    K = config["kernel_size"]
    nc = config["n_classes"]
    S = len(config["input_names"])
    T = len(tasks)

    B = x.shape[0]
    if feature.ndim == 3:
        feature = feature[:, :, 0]

    x_sig = jnp.transpose(x, (1, 0, 2))                 # (S, B, L)
    width = T * nc
    out_pad = max(128, ((width + 127) // 128) * 128)    # lane-dense output slab

    kernel = functools.partial(
        _fused_kernel, n_signals=S, channel_n=C, kernel_size=K,
        n_tasks=T, n_classes=nc)

    smem_spec = pl.BlockSpec(memory_space=pltpu.MemorySpace.SMEM)
    vmem_spec = pl.BlockSpec(memory_space=pltpu.MemorySpace.VMEM)

    out_slab = pl.pallas_call(
        kernel,
        out_shape=jax.ShapeDtypeStruct((B, out_pad), jnp.float32),
        in_specs=[smem_spec, smem_spec] + [vmem_spec] * 8,
        out_specs=vmem_spec,
    )(
        params["conv_w"].reshape(-1),       # (S*C*K,)  SMEM scalars
        params["conv_b"].reshape(-1),       # (S*C,)    SMEM scalars
        x_sig,
        feature,
        params["bn_gamma"], params["bn_beta"],
        params["fc1_w"], params["fc1_b"],
        params["fc2_w"], params["fc2_b"],
    )

    return {task: out_slab[:, t * nc:(t + 1) * nc]
            for t, task in enumerate(tasks)}


# -----------------------------------------------------------------------------
# Deterministic parameter initialization (task/signal-stacked layout)
# -----------------------------------------------------------------------------
def init_params(key, config):
    C = config["channel_n"]
    K = config["kernel_size"]
    S = len(config["input_names"])
    T = len(config["tasks"])
    F = config["n_features"]
    nc = config["n_classes"]
    D = S * C + F

    ks = jax.random.split(key, 8)
    return {
        "conv_w": 0.2 * jax.random.normal(ks[0], (S, C, K), jnp.float32),
        "conv_b": 0.1 * jax.random.normal(ks[1], (S, C), jnp.float32),
        "bn_gamma": 1.0 + 0.1 * jax.random.normal(ks[2], (T, D), jnp.float32),
        "bn_beta": 0.05 * jax.random.normal(ks[3], (T, D), jnp.float32),
        "fc1_w": 0.1 * jax.random.normal(ks[4], (T, D, 50), jnp.float32),
        "fc1_b": 0.05 * jax.random.normal(ks[5], (T, 50), jnp.float32),
        "fc2_w": 0.1 * jax.random.normal(ks[6], (T, nc, 50), jnp.float32),
        "fc2_b": 0.05 * jax.random.normal(ks[7], (T, nc), jnp.float32),
    }


# -----------------------------------------------------------------------------
# Pure-JAX reference (mirrors the PyTorch forward semantics)
# -----------------------------------------------------------------------------
def _reference_forward(x, feature, params, config):
    S = len(config["input_names"])
    K = config["kernel_size"]
    B, _, L = x.shape
    Tout = L - K + 1
    if feature.ndim == 3:
        feature = feature[:, :, 0]

    idx = jnp.arange(Tout)[:, None] + jnp.arange(K)[None, :]
    feats = []
    for s in range(S):
        patches = x[:, s, :][:, idx]                              # (B, Tout, K)
        y = jnp.einsum("btk,ck->btc", patches, params["conv_w"][s])
        y = y + params["conv_b"][s][None, None, :]
        y = jnp.maximum(y, 0.0)
        feats.append(jnp.mean(y, axis=1))                         # (B, C)
    feat_cnn = jnp.concatenate(feats, axis=-1)

    x_cat = jnp.concatenate([feat_cnn, feature], axis=1)
    mean = jnp.mean(x_cat, axis=0, keepdims=True)
    var = jnp.mean((x_cat - mean) ** 2, axis=0, keepdims=True)
    xn = (x_cat - mean) / jnp.sqrt(var + 1e-5)

    out = {}
    for t, task in enumerate(config["tasks"]):
        z = xn * params["bn_gamma"][t] + params["bn_beta"][t]
        h = jnp.maximum(z, 0.0)
        h1 = h @ params["fc1_w"][t] + params["fc1_b"][t]
        out[task] = h1 @ params["fc2_w"][t].T + params["fc2_b"][t]
    return out


# -----------------------------------------------------------------------------
if __name__ == "__main__":
    config = {
        "input_names": ["ppg", "ecg"],   # late fusion: one extractor per signal
        "tasks": ["RR", "HR"],           # output_names
        "channel_n": 8,
        "kernel_size": 5,
        "n_features": 3,
        "n_classes": 1,
        "fusion_type": "late",
    }

    B, L = 4, 64
    key = jax.random.PRNGKey(0)
    kx, kf = jax.random.split(key)

    x = jax.random.normal(kx, (B, len(config["input_names"]), L), jnp.float32)
    feature = jax.random.normal(kf, (B, config["n_features"], 2), jnp.float32)

    params = init_params(jax.random.PRNGKey(1), config)

    fwd = jax.jit(functools.partial(resp_multiverse_forward, config=config))
    out = fwd(x, feature, params)
    out = jax.tree_util.tree_map(jax.block_until_ready, out)

    ref = _reference_forward(x, feature, params, config)
    for t, task in enumerate(config["tasks"]):
        assert out[task].shape == (B, config["n_classes"]), out[task].shape
        assert out[task].dtype == jnp.float32
        assert jnp.allclose(out[task], ref[task], rtol=1e-2, atol=1e-2), (
            task, out[task], ref[task])
    print("KERNEL_OK")
</pallas_src>

<mosaic_0001>
module attributes {stable_mosaic.version = 11 : i64} {
  func.func @_fused_kernel(%arg0: memref<80xf32, #tpu.memory_space<smem>>, %arg1: memref<16xf32, #tpu.memory_space<smem>>, %arg2: memref<2x4x64xf32, #tpu.memory_space<vmem>>, %arg3: memref<4x3xf32, #tpu.memory_space<vmem>>, %arg4: memref<2x19xf32, #tpu.memory_space<vmem>>, %arg5: memref<2x19xf32, #tpu.memory_space<vmem>>, %arg6: memref<2x19x50xf32, #tpu.memory_space<vmem>>, %arg7: memref<2x50xf32, #tpu.memory_space<vmem>>, %arg8: memref<2x1x50xf32, #tpu.memory_space<vmem>>, %arg9: memref<2x1xf32, #tpu.memory_space<vmem>>, %arg10: memref<4x128xf32, #tpu.memory_space<vmem>>) attributes {dimension_semantics = [], scalar_prefetch = 0 : i64, scratch_operands = 0 : i64, tpu.core_type = #tpu.core_type<tc>} {
    %c0 = arith.constant 0 : index
    %c0_0 = arith.constant 0 : index
    %c0_1 = arith.constant 0 : index
    %0 = vector.load %arg2[%c0, %c0_0, %c0_1] : memref<2x4x64xf32, #tpu.memory_space<vmem>>, vector<2x4x64xf32>
    %1 = vector.extract_strided_slice %0 {offsets = [0, 0, 0], sizes = [1, 4, 64], strides = [1, 1, 1]} : vector<2x4x64xf32> to vector<1x4x64xf32>
    %2 = vector.shape_cast %1 : vector<1x4x64xf32> to vector<4x64xf32>
    %3 = vector.extract_strided_slice %2 {offsets = [0, 0], sizes = [4, 60], strides = [1, 1]} : vector<4x64xf32> to vector<4x60xf32>
    %4 = vector.extract_strided_slice %2 {offsets = [0, 1], sizes = [4, 60], strides = [1, 1]} : vector<4x64xf32> to vector<4x60xf32>
    %5 = vector.extract_strided_slice %2 {offsets = [0, 2], sizes = [4, 60], strides = [1, 1]} : vector<4x64xf32> to vector<4x60xf32>
    %6 = vector.extract_strided_slice %2 {offsets = [0, 3], sizes = [4, 60], strides = [1, 1]} : vector<4x64xf32> to vector<4x60xf32>
    %7 = vector.extract_strided_slice %2 {offsets = [0, 4], sizes = [4, 60], strides = [1, 1]} : vector<4x64xf32> to vector<4x60xf32>
    %c0_2 = arith.constant 0 : index
    %8 = memref.load %arg0[%c0_2] : memref<80xf32, #tpu.memory_space<smem>>
    %9 = vector.broadcast %8 : f32 to vector<4x60xf32>
    %10 = arith.mulf %3, %9 : vector<4x60xf32>
    %c1 = arith.constant 1 : index
    %11 = memref.load %arg0[%c1] : memref<80xf32, #tpu.memory_space<smem>>
    %12 = vector.broadcast %11 : f32 to vector<4x60xf32>
    %13 = arith.mulf %4, %12 : vector<4x60xf32>
    %14 = arith.addf %10, %13 : vector<4x60xf32>
    %c2 = arith.constant 2 : index
    %15 = memref.load %arg0[%c2] : memref<80xf32, #tpu.memory_space<smem>>
    %16 = vector.broadcast %15 : f32 to vector<4x60xf32>
    %17 = arith.mulf %5, %16 : vector<4x60xf32>
    %18 = arith.addf %14, %17 : vector<4x60xf32>
    %c3 = arith.constant 3 : index
    %19 = memref.load %arg0[%c3] : memref<80xf32, #tpu.memory_space<smem>>
    %20 = vector.broadcast %19 : f32 to vector<4x60xf32>
    %21 = arith.mulf %6, %20 : vector<4x60xf32>
    %22 = arith.addf %18, %21 : vector<4x60xf32>
    %c4 = arith.constant 4 : index
    %23 = memref.load %arg0[%c4] : memref<80xf32, #tpu.memory_space<smem>>
    %24 = vector.broadcast %23 : f32 to vector<4x60xf32>
    %25 = arith.mulf %7, %24 : vector<4x60xf32>
    %26 = arith.addf %22, %25 : vector<4x60xf32>
    %c0_3 = arith.constant 0 : index
    %27 = memref.load %arg1[%c0_3] : memref<16xf32, #tpu.memory_space<smem>>
    %28 = vector.broadcast %27 : f32 to vector<4x60xf32>
    %29 = arith.addf %26, %28 : vector<4x60xf32>
    %cst = arith.constant 0.000000e+00 : f32
    %30 = vector.broadcast %cst : f32 to vector<4x60xf32>
    %31 = arith.maximumf %29, %30 : vector<4x60xf32>
    %cst_4 = arith.constant dense<0.000000e+00> : vector<4xf32>
    %32 = vector.multi_reduction <add>, %31, %cst_4 [1] : vector<4x60xf32> to vector<4xf32>
    %33 = vector.shape_cast %32 : vector<4xf32> to vector<4x1xf32>
    %cst_5 = arith.constant 0.0166666675 : f32
    %34 = vector.broadcast %cst_5 : f32 to vector<4x1xf32>
    %35 = arith.mulf %33, %34 : vector<4x1xf32>
    %c5 = arith.constant 5 : index
    %36 = memref.load %arg0[%c5] : memref<80xf32, #tpu.memory_space<smem>>
    %37 = vector.broadcast %36 : f32 to vector<4x60xf32>
    %38 = arith.mulf %3, %37 : vector<4x60xf32>
    %c6 = arith.constant 6 : index
    %39 = memref.load %arg0[%c6] : memref<80xf32, #tpu.memory_space<smem>>
    %40 = vector.broadcast %39 : f32 to vector<4x60xf32>
    %41 = arith.mulf %4, %40 : vector<4x60xf32>
    %42 = arith.addf %38, %41 : vector<4x60xf32>
    %c7 = arith.constant 7 : index
    %43 = memref.load %arg0[%c7] : memref<80xf32, #tpu.memory_space<smem>>
    %44 = vector.broadcast %43 : f32 to vector<4x60xf32>
    %45 = arith.mulf %5, %44 : vector<4x60xf32>
    %46 = arith.addf %42, %45 : vector<4x60xf32>
    %c8 = arith.constant 8 : index
    %47 = memref.load %arg0[%c8] : memref<80xf32, #tpu.memory_space<smem>>
    %48 = vector.broadcast %47 : f32 to vector<4x60xf32>
    %49 = arith.mulf %6, %48 : vector<4x60xf32>
    %50 = arith.addf %46, %49 : vector<4x60xf32>
    %c9 = arith.constant 9 : index
    %51 = memref.load %arg0[%c9] : memref<80xf32, #tpu.memory_space<smem>>
    %52 = vector.broadcast %51 : f32 to vector<4x60xf32>
    %53 = arith.mulf %7, %52 : vector<4x60xf32>
    %54 = arith.addf %50, %53 : vector<4x60xf32>
    %c1_6 = arith.constant 1 : index
    %55 = memref.load %arg1[%c1_6] : memref<16xf32, #tpu.memory_space<smem>>
    %56 = vector.broadcast %55 : f32 to vector<4x60xf32>
    %57 = arith.addf %54, %56 : vector<4x60xf32>
    %cst_7 = arith.constant 0.000000e+00 : f32
    %58 = vector.broadcast %cst_7 : f32 to vector<4x60xf32>
    %59 = arith.maximumf %57, %58 : vector<4x60xf32>
    %cst_8 = arith.constant dense<0.000000e+00> : vector<4xf32>
    %60 = vector.multi_reduction <add>, %59, %cst_8 [1] : vector<4x60xf32> to vector<4xf32>
    %61 = vector.shape_cast %60 : vector<4xf32> to vector<4x1xf32>
    %cst_9 = arith.constant 0.0166666675 : f32
    %62 = vector.broadcast %cst_9 : f32 to vector<4x1xf32>
    %63 = arith.mulf %61, %62 : vector<4x1xf32>
    %c10 = arith.constant 10 : index
    %64 = memref.load %arg0[%c10] : memref<80xf32, #tpu.memory_space<smem>>
    %65 = vector.broadcast %64 : f32 to vector<4x60xf32>
    %66 = arith.mulf %3, %65 : vector<4x60xf32>
    %c11 = arith.constant 11 : index
    %67 = memref.load %arg0[%c11] : memref<80xf32, #tpu.memory_space<smem>>
    %68 = vector.broadcast %67 : f32 to vector<4x60xf32>
    %69 = arith.mulf %4, %68 : vector<4x60xf32>
    %70 = arith.addf %66, %69 : vector<4x60xf32>
    %c12 = arith.constant 12 : index
    %71 = memref.load %arg0[%c12] : memref<80xf32, #tpu.memory_space<smem>>
    %72 = vector.broadcast %71 : f32 to vector<4x60xf32>
    %73 = arith.mulf %5, %72 : vector<4x60xf32>
    %74 = arith.addf %70, %73 : vector<4x60xf32>
    %c13 = arith.constant 13 : index
    %75 = memref.load %arg0[%c13] : memref<80xf32, #tpu.memory_space<smem>>
    %76 = vector.broadcast %75 : f32 to vector<4x60xf32>
    %77 = arith.mulf %6, %76 : vector<4x60xf32>
    %78 = arith.addf %74, %77 : vector<4x60xf32>
    %c14 = arith.constant 14 : index
    %79 = memref.load %arg0[%c14] : memref<80xf32, #tpu.memory_space<smem>>
    %80 = vector.broadcast %79 : f32 to vector<4x60xf32>
    %81 = arith.mulf %7, %80 : vector<4x60xf32>
    %82 = arith.addf %78, %81 : vector<4x60xf32>
    %c2_10 = arith.constant 2 : index
    %83 = memref.load %arg1[%c2_10] : memref<16xf32, #tpu.memory_space<smem>>
    %84 = vector.broadcast %83 : f32 to vector<4x60xf32>
    %85 = arith.addf %82, %84 : vector<4x60xf32>
    %cst_11 = arith.constant 0.000000e+00 : f32
    %86 = vector.broadcast %cst_11 : f32 to vector<4x60xf32>
    %87 = arith.maximumf %85, %86 : vector<4x60xf32>
    %cst_12 = arith.constant dense<0.000000e+00> : vector<4xf32>
    %88 = vector.multi_reduction <add>, %87, %cst_12 [1] : vector<4x60xf32> to vector<4xf32>
    %89 = vector.shape_cast %88 : vector<4xf32> to vector<4x1xf32>
    %cst_13 = arith.constant 0.0166666675 : f32
    %90 = vector.broadcast %cst_13 : f32 to vector<4x1xf32>
    %91 = arith.mulf %89, %90 : vector<4x1xf32>
    %c15 = arith.constant 15 : index
    %92 = memref.load %arg0[%c15] : memref<80xf32, #tpu.memory_space<smem>>
    %93 = vector.broadcast %92 : f32 to vector<4x60xf32>
    %94 = arith.mulf %3, %93 : vector<4x60xf32>
    %c16 = arith.constant 16 : index
    %95 = memref.load %arg0[%c16] : memref<80xf32, #tpu.memory_space<smem>>
    %96 = vector.broadcast %95 : f32 to vector<4x60xf32>
    %97 = arith.mulf %4, %96 : vector<4x60xf32>
    %98 = arith.addf %94, %97 : vector<4x60xf32>
    %c17 = arith.constant 17 : index
    %99 = memref.load %arg0[%c17] : memref<80xf32, #tpu.memory_space<smem>>
    %100 = vector.broadcast %99 : f32 to vector<4x60xf32>
    %101 = arith.mulf %5, %100 : vector<4x60xf32>
    %102 = arith.addf %98, %101 : vector<4x60xf32>
    %c18 = arith.constant 18 : index
    %103 = memref.load %arg0[%c18] : memref<80xf32, #tpu.memory_space<smem>>
    %104 = vector.broadcast %103 : f32 to vector<4x60xf32>
    %105 = arith.mulf %6, %104 : vector<4x60xf32>
    %106 = arith.addf %102, %105 : vector<4x60xf32>
    %c19 = arith.constant 19 : index
    %107 = memref.load %arg0[%c19] : memref<80xf32, #tpu.memory_space<smem>>
    %108 = vector.broadcast %107 : f32 to vector<4x60xf32>
    %109 = arith.mulf %7, %108 : vector<4x60xf32>
    %110 = arith.addf %106, %109 : vector<4x60xf32>
    %c3_14 = arith.constant 3 : index
    %111 = memref.load %arg1[%c3_14] : memref<16xf32, #tpu.memory_space<smem>>
    %112 = vector.broadcast %111 : f32 to vector<4x60xf32>
    %113 = arith.addf %110, %112 : vector<4x60xf32>
    %cst_15 = arith.constant 0.000000e+00 : f32
    %114 = vector.broadcast %cst_15 : f32 to vector<4x60xf32>
    %115 = arith.maximumf %113, %114 : vector<4x60xf32>
    %cst_16 = arith.constant dense<0.000000e+00> : vector<4xf32>
    %116 = vector.multi_reduction <add>, %115, %cst_16 [1] : vector<4x60xf32> to vector<4xf32>
    %117 = vector.shape_cast %116 : vector<4xf32> to vector<4x1xf32>
    %cst_17 = arith.constant 0.0166666675 : f32
    %118 = vector.broadcast %cst_17 : f32 to vector<4x1xf32>
    %119 = arith.mulf %117, %118 : vector<4x1xf32>
    %c20 = arith.constant 20 : index
    %120 = memref.load %arg0[%c20] : memref<80xf32, #tpu.memory_space<smem>>
    %121 = vector.broadcast %120 : f32 to vector<4x60xf32>
    %122 = arith.mulf %3, %121 : vector<4x60xf32>
    %c21 = arith.constant 21 : index
    %123 = memref.load %arg0[%c21] : memref<80xf32, #tpu.memory_space<smem>>
    %124 = vector.broadcast %123 : f32 to vector<4x60xf32>
    %125 = arith.mulf %4, %124 : vector<4x60xf32>
    %126 = arith.addf %122, %125 : vector<4x60xf32>
    %c22 = arith.constant 22 : index
    %127 = memref.load %arg0[%c22] : memref<80xf32, #tpu.memory_space<smem>>
    %128 = vector.broadcast %127 : f32 to vector<4x60xf32>
    %129 = arith.mulf %5, %128 : vector<4x60xf32>
    %130 = arith.addf %126, %129 : vector<4x60xf32>
    %c23 = arith.constant 23 : index
    %131 = memref.load %arg0[%c23] : memref<80xf32, #tpu.memory_space<smem>>
    %132 = vector.broadcast %131 : f32 to vector<4x60xf32>
    %133 = arith.mulf %6, %132 : vector<4x60xf32>
    %134 = arith.addf %130, %133 : vector<4x60xf32>
    %c24 = arith.constant 24 : index
    %135 = memref.load %arg0[%c24] : memref<80xf32, #tpu.memory_space<smem>>
    %136 = vector.broadcast %135 : f32 to vector<4x60xf32>
    %137 = arith.mulf %7, %136 : vector<4x60xf32>
    %138 = arith.addf %134, %137 : vector<4x60xf32>
    %c4_18 = arith.constant 4 : index
    %139 = memref.load %arg1[%c4_18] : memref<16xf32, #tpu.memory_space<smem>>
    %140 = vector.broadcast %139 : f32 to vector<4x60xf32>
    %141 = arith.addf %138, %140 : vector<4x60xf32>
    %cst_19 = arith.constant 0.000000e+00 : f32
    %142 = vector.broadcast %cst_19 : f32 to vector<4x60xf32>
    %143 = arith.maximumf %141, %142 : vector<4x60xf32>
    %cst_20 = arith.constant dense<0.000000e+00> : vector<4xf32>
    %144 = vector.multi_reduction <add>, %143, %cst_20 [1] : vector<4x60xf32> to vector<4xf32>
    %145 = vector.shape_cast %144 : vector<4xf32> to vector<4x1xf32>
    %cst_21 = arith.constant 0.0166666675 : f32
    %146 = vector.broadcast %cst_21 : f32 to vector<4x1xf32>
    %147 = arith.mulf %145, %146 : vector<4x1xf32>
    %c25 = arith.constant 25 : index
    %148 = memref.load %arg0[%c25] : memref<80xf32, #tpu.memory_space<smem>>
    %149 = vector.broadcast %148 : f32 to vector<4x60xf32>
    %150 = arith.mulf %3, %149 : vector<4x60xf32>
    %c26 = arith.constant 26 : index
    %151 = memref.load %arg0[%c26] : memref<80xf32, #tpu.memory_space<smem>>
    %152 = vector.broadcast %151 : f32 to vector<4x60xf32>
    %153 = arith.mulf %4, %152 : vector<4x60xf32>
    %154 = arith.addf %150, %153 : vector<4x60xf32>
    %c27 = arith.constant 27 : index
    %155 = memref.load %arg0[%c27] : memref<80xf32, #tpu.memory_space<smem>>
    %156 = vector.broadcast %155 : f32 to vector<4x60xf32>
    %157 = arith.mulf %5, %156 : vector<4x60xf32>
    %158 = arith.addf %154, %157 : vector<4x60xf32>
    %c28 = arith.constant 28 : index
    %159 = memref.load %arg0[%c28] : memref<80xf32, #tpu.memory_space<smem>>
    %160 = vector.broadcast %159 : f32 to vector<4x60xf32>
    %161 = arith.mulf %6, %160 : vector<4x60xf32>
    %162 = arith.addf %158, %161 : vector<4x60xf32>
    %c29 = arith.constant 29 : index
    %163 = memref.load %arg0[%c29] : memref<80xf32, #tpu.memory_space<smem>>
    %164 = vector.broadcast %163 : f32 to vector<4x60xf32>
    %165 = arith.mulf %7, %164 : vector<4x60xf32>
    %166 = arith.addf %162, %165 : vector<4x60xf32>
    %c5_22 = arith.constant 5 : index
    %167 = memref.load %arg1[%c5_22] : memref<16xf32, #tpu.memory_space<smem>>
    %168 = vector.broadcast %167 : f32 to vector<4x60xf32>
    %169 = arith.addf %166, %168 : vector<4x60xf32>
    %cst_23 = arith.constant 0.000000e+00 : f32
    %170 = vector.broadcast %cst_23 : f32 to vector<4x60xf32>
    %171 = arith.maximumf %169, %170 : vector<4x60xf32>
    %cst_24 = arith.constant dense<0.000000e+00> : vector<4xf32>
    %172 = vector.multi_reduction <add>, %171, %cst_24 [1] : vector<4x60xf32> to vector<4xf32>
    %173 = vector.shape_cast %172 : vector<4xf32> to vector<4x1xf32>
    %cst_25 = arith.constant 0.0166666675 : f32
    %174 = vector.broadcast %cst_25 : f32 to vector<4x1xf32>
    %175 = arith.mulf %173, %174 : vector<4x1xf32>
    %c30 = arith.constant 30 : index
    %176 = memref.load %arg0[%c30] : memref<80xf32, #tpu.memory_space<smem>>
    %177 = vector.broadcast %176 : f32 to vector<4x60xf32>
    %178 = arith.mulf %3, %177 : vector<4x60xf32>
    %c31 = arith.constant 31 : index
    %179 = memref.load %arg0[%c31] : memref<80xf32, #tpu.memory_space<smem>>
    %180 = vector.broadcast %179 : f32 to vector<4x60xf32>
    %181 = arith.mulf %4, %180 : vector<4x60xf32>
    %182 = arith.addf %178, %181 : vector<4x60xf32>
    %c32 = arith.constant 32 : index
    %183 = memref.load %arg0[%c32] : memref<80xf32, #tpu.memory_space<smem>>
    %184 = vector.broadcast %183 : f32 to vector<4x60xf32>
    %185 = arith.mulf %5, %184 : vector<4x60xf32>
    %186 = arith.addf %182, %185 : vector<4x60xf32>
    %c33 = arith.constant 33 : index
    %187 = memref.load %arg0[%c33] : memref<80xf32, #tpu.memory_space<smem>>
    %188 = vector.broadcast %187 : f32 to vector<4x60xf32>
    %189 = arith.mulf %6, %188 : vector<4x60xf32>
    %190 = arith.addf %186, %189 : vector<4x60xf32>
    %c34 = arith.constant 34 : index
    %191 = memref.load %arg0[%c34] : memref<80xf32, #tpu.memory_space<smem>>
    %192 = vector.broadcast %191 : f32 to vector<4x60xf32>
    %193 = arith.mulf %7, %192 : vector<4x60xf32>
    %194 = arith.addf %190, %193 : vector<4x60xf32>
    %c6_26 = arith.constant 6 : index
    %195 = memref.load %arg1[%c6_26] : memref<16xf32, #tpu.memory_space<smem>>
    %196 = vector.broadcast %195 : f32 to vector<4x60xf32>
    %197 = arith.addf %194, %196 : vector<4x60xf32>
    %cst_27 = arith.constant 0.000000e+00 : f32
    %198 = vector.broadcast %cst_27 : f32 to vector<4x60xf32>
    %199 = arith.maximumf %197, %198 : vector<4x60xf32>
    %cst_28 = arith.constant dense<0.000000e+00> : vector<4xf32>
    %200 = vector.multi_reduction <add>, %199, %cst_28 [1] : vector<4x60xf32> to vector<4xf32>
    %201 = vector.shape_cast %200 : vector<4xf32> to vector<4x1xf32>
    %cst_29 = arith.constant 0.0166666675 : f32
    %202 = vector.broadcast %cst_29 : f32 to vector<4x1xf32>
    %203 = arith.mulf %201, %202 : vector<4x1xf32>
    %c35 = arith.constant 35 : index
    %204 = memref.load %arg0[%c35] : memref<80xf32, #tpu.memory_space<smem>>
    %205 = vector.broadcast %204 : f32 to vector<4x60xf32>
    %206 = arith.mulf %3, %205 : vector<4x60xf32>
    %c36 = arith.constant 36 : index
    %207 = memref.load %arg0[%c36] : memref<80xf32, #tpu.memory_space<smem>>
    %208 = vector.broadcast %207 : f32 to vector<4x60xf32>
    %209 = arith.mulf %4, %208 : vector<4x60xf32>
    %210 = arith.addf %206, %209 : vector<4x60xf32>
    %c37 = arith.constant 37 : index
    %211 = memref.load %arg0[%c37] : memref<80xf32, #tpu.memory_space<smem>>
    %212 = vector.broadcast %211 : f32 to vector<4x60xf32>
    %213 = arith.mulf %5, %212 : vector<4x60xf32>
    %214 = arith.addf %210, %213 : vector<4x60xf32>
    %c38 = arith.constant 38 : index
    %215 = memref.load %arg0[%c38] : memref<80xf32, #tpu.memory_space<smem>>
    %216 = vector.broadcast %215 : f32 to vector<4x60xf32>
    %217 = arith.mulf %6, %216 : vector<4x60xf32>
    %218 = arith.addf %214, %217 : vector<4x60xf32>
    %c39 = arith.constant 39 : index
    %219 = memref.load %arg0[%c39] : memref<80xf32, #tpu.memory_space<smem>>
    %220 = vector.broadcast %219 : f32 to vector<4x60xf32>
    %221 = arith.mulf %7, %220 : vector<4x60xf32>
    %222 = arith.addf %218, %221 : vector<4x60xf32>
    %c7_30 = arith.constant 7 : index
    %223 = memref.load %arg1[%c7_30] : memref<16xf32, #tpu.memory_space<smem>>
    %224 = vector.broadcast %223 : f32 to vector<4x60xf32>
    %225 = arith.addf %222, %224 : vector<4x60xf32>
    %cst_31 = arith.constant 0.000000e+00 : f32
    %226 = vector.broadcast %cst_31 : f32 to vector<4x60xf32>
    %227 = arith.maximumf %225, %226 : vector<4x60xf32>
    %cst_32 = arith.constant dense<0.000000e+00> : vector<4xf32>
    %228 = vector.multi_reduction <add>, %227, %cst_32 [1] : vector<4x60xf32> to vector<4xf32>
    %229 = vector.shape_cast %228 : vector<4xf32> to vector<4x1xf32>
    %cst_33 = arith.constant 0.0166666675 : f32
    %230 = vector.broadcast %cst_33 : f32 to vector<4x1xf32>
    %231 = arith.mulf %229, %230 : vector<4x1xf32>
    %232 = vector.extract_strided_slice %0 {offsets = [1, 0, 0], sizes = [1, 4, 64], strides = [1, 1, 1]} : vector<2x4x64xf32> to vector<1x4x64xf32>
    %233 = vector.shape_cast %232 : vector<1x4x64xf32> to vector<4x64xf32>
    %234 = vector.extract_strided_slice %233 {offsets = [0, 0], sizes = [4, 60], strides = [1, 1]} : vector<4x64xf32> to vector<4x60xf32>
    %235 = vector.extract_strided_slice %233 {offsets = [0, 1], sizes = [4, 60], strides = [1, 1]} : vector<4x64xf32> to vector<4x60xf32>
    %236 = vector.extract_strided_slice %233 {offsets = [0, 2], sizes = [4, 60], strides = [1, 1]} : vector<4x64xf32> to vector<4x60xf32>
    %237 = vector.extract_strided_slice %233 {offsets = [0, 3], sizes = [4, 60], strides = [1, 1]} : vector<4x64xf32> to vector<4x60xf32>
    %238 = vector.extract_strided_slice %233 {offsets = [0, 4], sizes = [4, 60], strides = [1, 1]} : vector<4x64xf32> to vector<4x60xf32>
    %c40 = arith.constant 40 : index
    %239 = memref.load %arg0[%c40] : memref<80xf32, #tpu.memory_space<smem>>
    %240 = vector.broadcast %239 : f32 to vector<4x60xf32>
    %241 = arith.mulf %234, %240 : vector<4x60xf32>
    %c41 = arith.constant 41 : index
    %242 = memref.load %arg0[%c41] : memref<80xf32, #tpu.memory_space<smem>>
    %243 = vector.broadcast %242 : f32 to vector<4x60xf32>
    %244 = arith.mulf %235, %243 : vector<4x60xf32>
    %245 = arith.addf %241, %244 : vector<4x60xf32>
    %c42 = arith.constant 42 : index
    %246 = memref.load %arg0[%c42] : memref<80xf32, #tpu.memory_space<smem>>
    %247 = vector.broadcast %246 : f32 to vector<4x60xf32>
    %248 = arith.mulf %236, %247 : vector<4x60xf32>
    %249 = arith.addf %245, %248 : vector<4x60xf32>
    %c43 = arith.constant 43 : index
    %250 = memref.load %arg0[%c43] : memref<80xf32, #tpu.memory_space<smem>>
    %251 = vector.broadcast %250 : f32 to vector<4x60xf32>
    %252 = arith.mulf %237, %251 : vector<4x60xf32>
    %253 = arith.addf %249, %252 : vector<4x60xf32>
    %c44 = arith.constant 44 : index
    %254 = memref.load %arg0[%c44] : memref<80xf32, #tpu.memory_space<smem>>
    %255 = vector.broadcast %254 : f32 to vector<4x60xf32>
    %256 = arith.mulf %238, %255 : vector<4x60xf32>
    %257 = arith.addf %253, %256 : vector<4x60xf32>
    %c8_34 = arith.constant 8 : index
    %258 = memref.load %arg1[%c8_34] : memref<16xf32, #tpu.memory_space<smem>>
    %259 = vector.broadcast %258 : f32 to vector<4x60xf32>
    %260 = arith.addf %257, %259 : vector<4x60xf32>
    %cst_35 = arith.constant 0.000000e+00 : f32
    %261 = vector.broadcast %cst_35 : f32 to vector<4x60xf32>
    %262 = arith.maximumf %260, %261 : vector<4x60xf32>
    %cst_36 = arith.constant dense<0.000000e+00> : vector<4xf32>
    %263 = vector.multi_reduction <add>, %262, %cst_36 [1] : vector<4x60xf32> to vector<4xf32>
    %264 = vector.shape_cast %263 : vector<4xf32> to vector<4x1xf32>
    %cst_37 = arith.constant 0.0166666675 : f32
    %265 = vector.broadcast %cst_37 : f32 to vector<4x1xf32>
    %266 = arith.mulf %264, %265 : vector<4x1xf32>
    %c45 = arith.constant 45 : index
    %267 = memref.load %arg0[%c45] : memref<80xf32, #tpu.memory_space<smem>>
    %268 = vector.broadcast %267 : f32 to vector<4x60xf32>
    %269 = arith.mulf %234, %268 : vector<4x60xf32>
    %c46 = arith.constant 46 : index
    %270 = memref.load %arg0[%c46] : memref<80xf32, #tpu.memory_space<smem>>
    %271 = vector.broadcast %270 : f32 to vector<4x60xf32>
    %272 = arith.mulf %235, %271 : vector<4x60xf32>
    %273 = arith.addf %269, %272 : vector<4x60xf32>
    %c47 = arith.constant 47 : index
    %274 = memref.load %arg0[%c47] : memref<80xf32, #tpu.memory_space<smem>>
    %275 = vector.broadcast %274 : f32 to vector<4x60xf32>
    %276 = arith.mulf %236, %275 : vector<4x60xf32>
    %277 = arith.addf %273, %276 : vector<4x60xf32>
    %c48 = arith.constant 48 : index
    %278 = memref.load %arg0[%c48] : memref<80xf32, #tpu.memory_space<smem>>
    %279 = vector.broadcast %278 : f32 to vector<4x60xf32>
    %280 = arith.mulf %237, %279 : vector<4x60xf32>
    %281 = arith.addf %277, %280 : vector<4x60xf32>
    %c49 = arith.constant 49 : index
    %282 = memref.load %arg0[%c49] : memref<80xf32, #tpu.memory_space<smem>>
    %283 = vector.broadcast %282 : f32 to vector<4x60xf32>
    %284 = arith.mulf %238, %283 : vector<4x60xf32>
    %285 = arith.addf %281, %284 : vector<4x60xf32>
    %c9_38 = arith.constant 9 : index
    %286 = memref.load %arg1[%c9_38] : memref<16xf32, #tpu.memory_space<smem>>
    %287 = vector.broadcast %286 : f32 to vector<4x60xf32>
    %288 = arith.addf %285, %287 : vector<4x60xf32>
    %cst_39 = arith.constant 0.000000e+00 : f32
    %289 = vector.broadcast %cst_39 : f32 to vector<4x60xf32>
    %290 = arith.maximumf %288, %289 : vector<4x60xf32>
    %cst_40 = arith.constant dense<0.000000e+00> : vector<4xf32>
    %291 = vector.multi_reduction <add>, %290, %cst_40 [1] : vector<4x60xf32> to vector<4xf32>
    %292 = vector.shape_cast %291 : vector<4xf32> to vector<4x1xf32>
    %cst_41 = arith.constant 0.0166666675 : f32
    %293 = vector.broadcast %cst_41 : f32 to vector<4x1xf32>
    %294 = arith.mulf %292, %293 : vector<4x1xf32>
    %c50 = arith.constant 50 : index
    %295 = memref.load %arg0[%c50] : memref<80xf32, #tpu.memory_space<smem>>
    %296 = vector.broadcast %295 : f32 to vector<4x60xf32>
    %297 = arith.mulf %234, %296 : vector<4x60xf32>
    %c51 = arith.constant 51 : index
    %298 = memref.load %arg0[%c51] : memref<80xf32, #tpu.memory_space<smem>>
    %299 = vector.broadcast %298 : f32 to vector<4x60xf32>
    %300 = arith.mulf %235, %299 : vector<4x60xf32>
    %301 = arith.addf %297, %300 : vector<4x60xf32>
    %c52 = arith.constant 52 : index
    %302 = memref.load %arg0[%c52] : memref<80xf32, #tpu.memory_space<smem>>
    %303 = vector.broadcast %302 : f32 to vector<4x60xf32>
    %304 = arith.mulf %236, %303 : vector<4x60xf32>
    %305 = arith.addf %301, %304 : vector<4x60xf32>
    %c53 = arith.constant 53 : index
    %306 = memref.load %arg0[%c53] : memref<80xf32, #tpu.memory_space<smem>>
    %307 = vector.broadcast %306 : f32 to vector<4x60xf32>
    %308 = arith.mulf %237, %307 : vector<4x60xf32>
    %309 = arith.addf %305, %308 : vector<4x60xf32>
    %c54 = arith.constant 54 : index
    %310 = memref.load %arg0[%c54] : memref<80xf32, #tpu.memory_space<smem>>
    %311 = vector.broadcast %310 : f32 to vector<4x60xf32>
    %312 = arith.mulf %238, %311 : vector<4x60xf32>
    %313 = arith.addf %309, %312 : vector<4x60xf32>
    %c10_42 = arith.constant 10 : index
    %314 = memref.load %arg1[%c10_42] : memref<16xf32, #tpu.memory_space<smem>>
    %315 = vector.broadcast %314 : f32 to vector<4x60xf32>
    %316 = arith.addf %313, %315 : vector<4x60xf32>
    %cst_43 = arith.constant 0.000000e+00 : f32
    %317 = vector.broadcast %cst_43 : f32 to vector<4x60xf32>
    %318 = arith.maximumf %316, %317 : vector<4x60xf32>
    %cst_44 = arith.constant dense<0.000000e+00> : vector<4xf32>
    %319 = vector.multi_reduction <add>, %318, %cst_44 [1] : vector<4x60xf32> to vector<4xf32>
    %320 = vector.shape_cast %319 : vector<4xf32> to vector<4x1xf32>
    %cst_45 = arith.constant 0.0166666675 : f32
    %321 = vector.broadcast %cst_45 : f32 to vector<4x1xf32>
    %322 = arith.mulf %320, %321 : vector<4x1xf32>
    %c55 = arith.constant 55 : index
    %323 = memref.load %arg0[%c55] : memref<80xf32, #tpu.memory_space<smem>>
    %324 = vector.broadcast %323 : f32 to vector<4x60xf32>
    %325 = arith.mulf %234, %324 : vector<4x60xf32>
    %c56 = arith.constant 56 : index
    %326 = memref.load %arg0[%c56] : memref<80xf32, #tpu.memory_space<smem>>
    %327 = vector.broadcast %326 : f32 to vector<4x60xf32>
    %328 = arith.mulf %235, %327 : vector<4x60xf32>
    %329 = arith.addf %325, %328 : vector<4x60xf32>
    %c57 = arith.constant 57 : index
    %330 = memref.load %arg0[%c57] : memref<80xf32, #tpu.memory_space<smem>>
    %331 = vector.broadcast %330 : f32 to vector<4x60xf32>
    %332 = arith.mulf %236, %331 : vector<4x60xf32>
    %333 = arith.addf %329, %332 : vector<4x60xf32>
    %c58 = arith.constant 58 : index
    %334 = memref.load %arg0[%c58] : memref<80xf32, #tpu.memory_space<smem>>
    %335 = vector.broadcast %334 : f32 to vector<4x60xf32>
    %336 = arith.mulf %237, %335 : vector<4x60xf32>
    %337 = arith.addf %333, %336 : vector<4x60xf32>
    %c59 = arith.constant 59 : index
    %338 = memref.load %arg0[%c59] : memref<80xf32, #tpu.memory_space<smem>>
    %339 = vector.broadcast %338 : f32 to vector<4x60xf32>
    %340 = arith.mulf %238, %339 : vector<4x60xf32>
    %341 = arith.addf %337, %340 : vector<4x60xf32>
    %c11_46 = arith.constant 11 : index
    %342 = memref.load %arg1[%c11_46] : memref<16xf32, #tpu.memory_space<smem>>
    %343 = vector.broadcast %342 : f32 to vector<4x60xf32>
    %344 = arith.addf %341, %343 : vector<4x60xf32>
    %cst_47 = arith.constant 0.000000e+00 : f32
    %345 = vector.broadcast %cst_47 : f32 to vector<4x60xf32>
    %346 = arith.maximumf %344, %345 : vector<4x60xf32>
    %cst_48 = arith.constant dense<0.000000e+00> : vector<4xf32>
    %347 = vector.multi_reduction <add>, %346, %cst_48 [1] : vector<4x60xf32> to vector<4xf32>
    %348 = vector.shape_cast %347 : vector<4xf32> to vector<4x1xf32>
    %cst_49 = arith.constant 0.0166666675 : f32
    %349 = vector.broadcast %cst_49 : f32 to vector<4x1xf32>
    %350 = arith.mulf %348, %349 : vector<4x1xf32>
    %c60 = arith.constant 60 : index
    %351 = memref.load %arg0[%c60] : memref<80xf32, #tpu.memory_space<smem>>
    %352 = vector.broadcast %351 : f32 to vector<4x60xf32>
    %353 = arith.mulf %234, %352 : vector<4x60xf32>
    %c61 = arith.constant 61 : index
    %354 = memref.load %arg0[%c61] : memref<80xf32, #tpu.memory_space<smem>>
    %355 = vector.broadcast %354 : f32 to vector<4x60xf32>
    %356 = arith.mulf %235, %355 : vector<4x60xf32>
    %357 = arith.addf %353, %356 : vector<4x60xf32>
    %c62 = arith.constant 62 : index
    %358 = memref.load %arg0[%c62] : memref<80xf32, #tpu.memory_space<smem>>
    %359 = vector.broadcast %358 : f32 to vector<4x60xf32>
    %360 = arith.mulf %236, %359 : vector<4x60xf32>
    %361 = arith.addf %357, %360 : vector<4x60xf32>
    %c63 = arith.constant 63 : index
    %362 = memref.load %arg0[%c63] : memref<80xf32, #tpu.memory_space<smem>>
    %363 = vector.broadcast %362 : f32 to vector<4x60xf32>
    %364 = arith.mulf %237, %363 : vector<4x60xf32>
    %365 = arith.addf %361, %364 : vector<4x60xf32>
    %c64 = arith.constant 64 : index
    %366 = memref.load %arg0[%c64] : memref<80xf32, #tpu.memory_space<smem>>
    %367 = vector.broadcast %366 : f32 to vector<4x60xf32>
    %368 = arith.mulf %238, %367 : vector<4x60xf32>
    %369 = arith.addf %365, %368 : vector<4x60xf32>
    %c12_50 = arith.constant 12 : index
    %370 = memref.load %arg1[%c12_50] : memref<16xf32, #tpu.memory_space<smem>>
    %371 = vector.broadcast %370 : f32 to vector<4x60xf32>
    %372 = arith.addf %369, %371 : vector<4x60xf32>
    %cst_51 = arith.constant 0.000000e+00 : f32
    %373 = vector.broadcast %cst_51 : f32 to vector<4x60xf32>
    %374 = arith.maximumf %372, %373 : vector<4x60xf32>
    %cst_52 = arith.constant dense<0.000000e+00> : vector<4xf32>
    %375 = vector.multi_reduction <add>, %374, %cst_52 [1] : vector<4x60xf32> to vector<4xf32>
    %376 = vector.shape_cast %375 : vector<4xf32> to vector<4x1xf32>
    %cst_53 = arith.constant 0.0166666675 : f32
    %377 = vector.broadcast %cst_53 : f32 to vector<4x1xf32>
    %378 = arith.mulf %376, %377 : vector<4x1xf32>
    %c65 = arith.constant 65 : index
    %379 = memref.load %arg0[%c65] : memref<80xf32, #tpu.memory_space<smem>>
    %380 = vector.broadcast %379 : f32 to vector<4x60xf32>
    %381 = arith.mulf %234, %380 : vector<4x60xf32>
    %c66 = arith.constant 66 : index
    %382 = memref.load %arg0[%c66] : memref<80xf32, #tpu.memory_space<smem>>
    %383 = vector.broadcast %382 : f32 to vector<4x60xf32>
    %384 = arith.mulf %235, %383 : vector<4x60xf32>
    %385 = arith.addf %381, %384 : vector<4x60xf32>
    %c67 = arith.constant 67 : index
    %386 = memref.load %arg0[%c67] : memref<80xf32, #tpu.memory_space<smem>>
    %387 = vector.broadcast %386 : f32 to vector<4x60xf32>
    %388 = arith.mulf %236, %387 : vector<4x60xf32>
    %389 = arith.addf %385, %388 : vector<4x60xf32>
    %c68 = arith.constant 68 : index
    %390 = memref.load %arg0[%c68] : memref<80xf32, #tpu.memory_space<smem>>
    %391 = vector.broadcast %390 : f32 to vector<4x60xf32>
    %392 = arith.mulf %237, %391 : vector<4x60xf32>
    %393 = arith.addf %389, %392 : vector<4x60xf32>
    %c69 = arith.constant 69 : index
    %394 = memref.load %arg0[%c69] : memref<80xf32, #tpu.memory_space<smem>>
    %395 = vector.broadcast %394 : f32 to vector<4x60xf32>
    %396 = arith.mulf %238, %395 : vector<4x60xf32>
    %397 = arith.addf %393, %396 : vector<4x60xf32>
    %c13_54 = arith.constant 13 : index
    %398 = memref.load %arg1[%c13_54] : memref<16xf32, #tpu.memory_space<smem>>
    %399 = vector.broadcast %398 : f32 to vector<4x60xf32>
    %400 = arith.addf %397, %399 : vector<4x60xf32>
    %cst_55 = arith.constant 0.000000e+00 : f32
    %401 = vector.broadcast %cst_55 : f32 to vector<4x60xf32>
    %402 = arith.maximumf %400, %401 : vector<4x60xf32>
    %cst_56 = arith.constant dense<0.000000e+00> : vector<4xf32>
    %403 = vector.multi_reduction <add>, %402, %cst_56 [1] : vector<4x60xf32> to vector<4xf32>
    %404 = vector.shape_cast %403 : vector<4xf32> to vector<4x1xf32>
    %cst_57 = arith.constant 0.0166666675 : f32
    %405 = vector.broadcast %cst_57 : f32 to vector<4x1xf32>
    %406 = arith.mulf %404, %405 : vector<4x1xf32>
    %c70 = arith.constant 70 : index
    %407 = memref.load %arg0[%c70] : memref<80xf32, #tpu.memory_space<smem>>
    %408 = vector.broadcast %407 : f32 to vector<4x60xf32>
    %409 = arith.mulf %234, %408 : vector<4x60xf32>
    %c71 = arith.constant 71 : index
    %410 = memref.load %arg0[%c71] : memref<80xf32, #tpu.memory_space<smem>>
    %411 = vector.broadcast %410 : f32 to vector<4x60xf32>
    %412 = arith.mulf %235, %411 : vector<4x60xf32>
    %413 = arith.addf %409, %412 : vector<4x60xf32>
    %c72 = arith.constant 72 : index
    %414 = memref.load %arg0[%c72] : memref<80xf32, #tpu.memory_space<smem>>
    %415 = vector.broadcast %414 : f32 to vector<4x60xf32>
    %416 = arith.mulf %236, %415 : vector<4x60xf32>
    %417 = arith.addf %413, %416 : vector<4x60xf32>
    %c73 = arith.constant 73 : index
    %418 = memref.load %arg0[%c73] : memref<80xf32, #tpu.memory_space<smem>>
    %419 = vector.broadcast %418 : f32 to vector<4x60xf32>
    %420 = arith.mulf %237, %419 : vector<4x60xf32>
    %421 = arith.addf %417, %420 : vector<4x60xf32>
    %c74 = arith.constant 74 : index
    %422 = memref.load %arg0[%c74] : memref<80xf32, #tpu.memory_space<smem>>
    %423 = vector.broadcast %422 : f32 to vector<4x60xf32>
    %424 = arith.mulf %238, %423 : vector<4x60xf32>
    %425 = arith.addf %421, %424 : vector<4x60xf32>
    %c14_58 = arith.constant 14 : index
    %426 = memref.load %arg1[%c14_58] : memref<16xf32, #tpu.memory_space<smem>>
    %427 = vector.broadcast %426 : f32 to vector<4x60xf32>
    %428 = arith.addf %425, %427 : vector<4x60xf32>
    %cst_59 = arith.constant 0.000000e+00 : f32
    %429 = vector.broadcast %cst_59 : f32 to vector<4x60xf32>
    %430 = arith.maximumf %428, %429 : vector<4x60xf32>
    %cst_60 = arith.constant dense<0.000000e+00> : vector<4xf32>
    %431 = vector.multi_reduction <add>, %430, %cst_60 [1] : vector<4x60xf32> to vector<4xf32>
    %432 = vector.shape_cast %431 : vector<4xf32> to vector<4x1xf32>
    %cst_61 = arith.constant 0.0166666675 : f32
    %433 = vector.broadcast %cst_61 : f32 to vector<4x1xf32>
    %434 = arith.mulf %432, %433 : vector<4x1xf32>
    %c75 = arith.constant 75 : index
    %435 = memref.load %arg0[%c75] : memref<80xf32, #tpu.memory_space<smem>>
    %436 = vector.broadcast %435 : f32 to vector<4x60xf32>
    %437 = arith.mulf %234, %436 : vector<4x60xf32>
    %c76 = arith.constant 76 : index
    %438 = memref.load %arg0[%c76] : memref<80xf32, #tpu.memory_space<smem>>
    %439 = vector.broadcast %438 : f32 to vector<4x60xf32>
    %440 = arith.mulf %235, %439 : vector<4x60xf32>
    %441 = arith.addf %437, %440 : vector<4x60xf32>
    %c77 = arith.constant 77 : index
    %442 = memref.load %arg0[%c77] : memref<80xf32, #tpu.memory_space<smem>>
    %443 = vector.broadcast %442 : f32 to vector<4x60xf32>
    %444 = arith.mulf %236, %443 : vector<4x60xf32>
    %445 = arith.addf %441, %444 : vector<4x60xf32>
    %c78 = arith.constant 78 : index
    %446 = memref.load %arg0[%c78] : memref<80xf32, #tpu.memory_space<smem>>
    %447 = vector.broadcast %446 : f32 to vector<4x60xf32>
    %448 = arith.mulf %237, %447 : vector<4x60xf32>
    %449 = arith.addf %445, %448 : vector<4x60xf32>
    %c79 = arith.constant 79 : index
    %450 = memref.load %arg0[%c79] : memref<80xf32, #tpu.memory_space<smem>>
    %451 = vector.broadcast %450 : f32 to vector<4x60xf32>
    %452 = arith.mulf %238, %451 : vector<4x60xf32>
    %453 = arith.addf %449, %452 : vector<4x60xf32>
    %c15_62 = arith.constant 15 : index
    %454 = memref.load %arg1[%c15_62] : memref<16xf32, #tpu.memory_space<smem>>
    %455 = vector.broadcast %454 : f32 to vector<4x60xf32>
    %456 = arith.addf %453, %455 : vector<4x60xf32>
    %cst_63 = arith.constant 0.000000e+00 : f32
    %457 = vector.broadcast %cst_63 : f32 to vector<4x60xf32>
    %458 = arith.maximumf %456, %457 : vector<4x60xf32>
    %cst_64 = arith.constant dense<0.000000e+00> : vector<4xf32>
    %459 = vector.multi_reduction <add>, %458, %cst_64 [1] : vector<4x60xf32> to vector<4xf32>
    %460 = vector.shape_cast %459 : vector<4xf32> to vector<4x1xf32>
    %cst_65 = arith.constant 0.0166666675 : f32
    %461 = vector.broadcast %cst_65 : f32 to vector<4x1xf32>
    %462 = arith.mulf %460, %461 : vector<4x1xf32>
    %463 = tpu.concatenate %35, %63, %91, %119, %147, %175, %203, %231, %266, %294, %322, %350, %378, %406, %434, %462 in 1 : vector<4x1xf32>, vector<4x1xf32>, vector<4x1xf32>, vector<4x1xf32>, vector<4x1xf32>, vector<4x1xf32>, vector<4x1xf32>, vector<4x1xf32>, vector<4x1xf32>, vector<4x1xf32>, vector<4x1xf32>, vector<4x1xf32>, vector<4x1xf32>, vector<4x1xf32>, vector<4x1xf32>, vector<4x1xf32> -> vector<4x16xf32>
    %c0_66 = arith.constant 0 : index
    %c0_67 = arith.constant 0 : index
    %464 = vector.load %arg3[%c0_66, %c0_67] : memref<4x3xf32, #tpu.memory_space<vmem>>, vector<4x3xf32>
    %465 = tpu.concatenate %463, %464 in 1 : vector<4x16xf32>, vector<4x3xf32> -> vector<4x19xf32>
    %cst_68 = arith.constant dense<0.000000e+00> : vector<19xf32>
    %466 = vector.multi_reduction <add>, %465, %cst_68 [0] : vector<4x19xf32> to vector<19xf32>
    %467 = vector.shape_cast %466 : vector<19xf32> to vector<1x19xf32>
    %cst_69 = arith.constant 4.000000e+00 : f32
    %468 = vector.broadcast %cst_69 : f32 to vector<1x19xf32>
    %469 = arith.divf %467, %468 : vector<1x19xf32>
    %470 = vector.broadcast %469 : vector<1x19xf32> to vector<4x19xf32>
    %471 = arith.subf %465, %470 : vector<4x19xf32>
    %472 = arith.mulf %471, %471 : vector<4x19xf32>
    %cst_70 = arith.constant dense<0.000000e+00> : vector<19xf32>
    %473 = vector.multi_reduction <add>, %472, %cst_70 [0] : vector<4x19xf32> to vector<19xf32>
    %474 = vector.shape_cast %473 : vector<19xf32> to vector<1x19xf32>
    %cst_71 = arith.constant 4.000000e+00 : f32
    %475 = vector.broadcast %cst_71 : f32 to vector<1x19xf32>
    %476 = arith.divf %474, %475 : vector<1x19xf32>
    %477 = vector.broadcast %469 : vector<1x19xf32> to vector<4x19xf32>
    %478 = arith.subf %465, %477 : vector<4x19xf32>
    %cst_72 = arith.constant 9.99999974E-6 : f32
    %479 = vector.broadcast %cst_72 : f32 to vector<1x19xf32>
    %480 = arith.addf %476, %479 : vector<1x19xf32>
    %481 = math.rsqrt %480 : vector<1x19xf32>
    %482 = vector.broadcast %481 : vector<1x19xf32> to vector<4x19xf32>
    %483 = arith.mulf %478, %482 : vector<4x19xf32>
    %c0_73 = arith.constant 0 : index
    %c0_74 = arith.constant 0 : index
    %484 = vector.load %arg4[%c0_73, %c0_74] : memref<2x19xf32, #tpu.memory_space<vmem>>, vector<2x19xf32>
    %c0_75 = arith.constant 0 : index
    %c0_76 = arith.constant 0 : index
    %485 = vector.load %arg5[%c0_75, %c0_76] : memref<2x19xf32, #tpu.memory_space<vmem>>, vector<2x19xf32>
    %c0_77 = arith.constant 0 : index
    %c0_78 = arith.constant 0 : index
    %486 = vector.load %arg7[%c0_77, %c0_78] : memref<2x50xf32, #tpu.memory_space<vmem>>, vector<2x50xf32>
    %c0_79 = arith.constant 0 : index
    %c0_80 = arith.constant 0 : index
    %487 = vector.load %arg9[%c0_79, %c0_80] : memref<2x1xf32, #tpu.memory_space<vmem>>, vector<2x1xf32>
    %488 = vector.extract_strided_slice %484 {offsets = [0, 0], sizes = [1, 19], strides = [1, 1]} : vector<2x19xf32> to vector<1x19xf32>
    %489 = vector.broadcast %488 : vector<1x19xf32> to vector<4x19xf32>
    %490 = arith.mulf %483, %489 : vector<4x19xf32>
    %491 = vector.extract_strided_slice %485 {offsets = [0, 0], sizes = [1, 19], strides = [1, 1]} : vector<2x19xf32> to vector<1x19xf32>
    %492 = vector.broadcast %491 : vector<1x19xf32> to vector<4x19xf32>
    %493 = arith.addf %490, %492 : vector<4x19xf32>
    %cst_81 = arith.constant 0.000000e+00 : f32
    %494 = vector.broadcast %cst_81 : f32 to vector<4x19xf32>
    %495 = arith.maximumf %493, %494 : vector<4x19xf32>
    %c0_82 = arith.constant 0 : index
    %c0_83 = arith.constant 0 : index
    %c0_84 = arith.constant 0 : index
    %496 = vector.load %arg6[%c0_82, %c0_83, %c0_84] : memref<2x19x50xf32, #tpu.memory_space<vmem>>, vector<1x19x50xf32>
    %497 = vector.shape_cast %496 : vector<1x19x50xf32> to vector<19x50xf32>
    %cst_85 = arith.constant dense<0.000000e+00> : vector<4x50xf32>
    %498 = tpu.matmul %495, %497, %cst_85 {dimension_numbers = #tpu.dot_dimension_numbers<[1], [0], [0], [1], [0, 0, 1, 1], [], []>} : vector<4x19xf32>, vector<19x50xf32>, vector<4x50xf32> -> vector<4x50xf32>
    %499 = vector.extract_strided_slice %486 {offsets = [0, 0], sizes = [1, 50], strides = [1, 1]} : vector<2x50xf32> to vector<1x50xf32>
    %500 = vector.broadcast %499 : vector<1x50xf32> to vector<4x50xf32>
    %501 = arith.addf %498, %500 : vector<4x50xf32>
    %c0_86 = arith.constant 0 : index
    %c0_87 = arith.constant 0 : index
    %c0_88 = arith.constant 0 : index
    %502 = vector.load %arg8[%c0_86, %c0_87, %c0_88] : memref<2x1x50xf32, #tpu.memory_space<vmem>>, vector<1x1x50xf32>
    %503 = vector.shape_cast %502 : vector<1x1x50xf32> to vector<1x50xf32>
    %504 = vector.broadcast %503 : vector<1x50xf32> to vector<4x50xf32>
    %505 = arith.mulf %501, %504 : vector<4x50xf32>
    %cst_89 = arith.constant dense<0.000000e+00> : vector<4xf32>
    %506 = vector.multi_reduction <add>, %505, %cst_89 [1] : vector<4x50xf32> to vector<4xf32>
    %507 = vector.shape_cast %506 : vector<4xf32> to vector<4x1xf32>
    %508 = vector.extract_strided_slice %487 {offsets = [0, 0], sizes = [1, 1], strides = [1, 1]} : vector<2x1xf32> to vector<1x1xf32>
    %509 = vector.broadcast %508 : vector<1x1xf32> to vector<4x1xf32>
    %510 = arith.addf %507, %509 : vector<4x1xf32>
    %511 = vector.extract_strided_slice %484 {offsets = [1, 0], sizes = [1, 19], strides = [1, 1]} : vector<2x19xf32> to vector<1x19xf32>
    %512 = vector.broadcast %511 : vector<1x19xf32> to vector<4x19xf32>
    %513 = arith.mulf %483, %512 : vector<4x19xf32>
    %514 = vector.extract_strided_slice %485 {offsets = [1, 0], sizes = [1, 19], strides = [1, 1]} : vector<2x19xf32> to vector<1x19xf32>
    %515 = vector.broadcast %514 : vector<1x19xf32> to vector<4x19xf32>
    %516 = arith.addf %513, %515 : vector<4x19xf32>
    %cst_90 = arith.constant 0.000000e+00 : f32
    %517 = vector.broadcast %cst_90 : f32 to vector<4x19xf32>
    %518 = arith.maximumf %516, %517 : vector<4x19xf32>
    %c1_91 = arith.constant 1 : index
    %c0_92 = arith.constant 0 : index
    %c0_93 = arith.constant 0 : index
    %519 = vector.load %arg6[%c1_91, %c0_92, %c0_93] : memref<2x19x50xf32, #tpu.memory_space<vmem>>, vector<1x19x50xf32>
    %520 = vector.shape_cast %519 : vector<1x19x50xf32> to vector<19x50xf32>
    %cst_94 = arith.constant dense<0.000000e+00> : vector<4x50xf32>
    %521 = tpu.matmul %518, %520, %cst_94 {dimension_numbers = #tpu.dot_dimension_numbers<[1], [0], [0], [1], [0, 0, 1, 1], [], []>} : vector<4x19xf32>, vector<19x50xf32>, vector<4x50xf32> -> vector<4x50xf32>
    %522 = vector.extract_strided_slice %486 {offsets = [1, 0], sizes = [1, 50], strides = [1, 1]} : vector<2x50xf32> to vector<1x50xf32>
    %523 = vector.broadcast %522 : vector<1x50xf32> to vector<4x50xf32>
    %524 = arith.addf %521, %523 : vector<4x50xf32>
    %c1_95 = arith.constant 1 : index
    %c0_96 = arith.constant 0 : index
    %c0_97 = arith.constant 0 : index
    %525 = vector.load %arg8[%c1_95, %c0_96, %c0_97] : memref<2x1x50xf32, #tpu.memory_space<vmem>>, vector<1x1x50xf32>
    %526 = vector.shape_cast %525 : vector<1x1x50xf32> to vector<1x50xf32>
    %527 = vector.broadcast %526 : vector<1x50xf32> to vector<4x50xf32>
    %528 = arith.mulf %524, %527 : vector<4x50xf32>
    %cst_98 = arith.constant dense<0.000000e+00> : vector<4xf32>
    %529 = vector.multi_reduction <add>, %528, %cst_98 [1] : vector<4x50xf32> to vector<4xf32>
    %530 = vector.shape_cast %529 : vector<4xf32> to vector<4x1xf32>
    %531 = vector.extract_strided_slice %487 {offsets = [1, 0], sizes = [1, 1], strides = [1, 1]} : vector<2x1xf32> to vector<1x1xf32>
    %532 = vector.broadcast %531 : vector<1x1xf32> to vector<4x1xf32>
    %533 = arith.addf %530, %532 : vector<4x1xf32>
    %534 = tpu.concatenate %510, %533 in 1 : vector<4x1xf32>, vector<4x1xf32> -> vector<4x2xf32>
    %cst_99 = arith.constant 0.000000e+00 : f32
    %535 = vector.broadcast %cst_99 : f32 to vector<4x126xf32>
    %536 = tpu.concatenate %534, %535 in 1 : vector<4x2xf32>, vector<4x126xf32> -> vector<4x128xf32>
    %c0_100 = arith.constant 0 : index
    %c0_101 = arith.constant 0 : index
    %537 = vector.load %arg10[%c0_100, %c0_101] : memref<4x128xf32, #tpu.memory_space<vmem>>, vector<4x128xf32>
    tpu.vector_store %arg10[%c0_100, %c0_101], %536 {strides = array<i32>} : memref<4x128xf32, #tpu.memory_space<vmem>>, vector<4x128xf32>,
    return
  }
}

</mosaic_0001>

<bundles_post_ra>
// kernel: resp_multiverse_forward.1
= control target key start
LH: loop header
LB: loop body
LE: loop exit
PB: predicated region body
PF: predicated region fallthrough
CT: control target
= control target key end

     0   :  { %15 = vsyncpa [#allocation3], 0  ;;  %s1557_s0 = inlined_call_operand.vmem [shape: f32[80], index: 0, kind: input, shape index: {}]   ;;  %s1558_s1 = inlined_call_operand.vmem [shape: f32[16], index: 1, kind: input, shape index: {}]   ;;  %s1559_s2 = inlined_call_operand.vmem [shape: f32[2,4,64], index: 2, kind: input, shape index: {}]   ;;  %s1560_s3 = inlined_call_operand.vmem [shape: f32[4,3], index: 3, kind: input, shape index: {}]   ;;  %s1561_s4 = inlined_call_operand.vmem [shape: f32[2,19], index: 4, kind: input, shape index: {}]   ;;  %s1562_s5 = inlined_call_operand.vmem [shape: f32[2,19], index: 5, kind: input, shape index: {}]   ;;  %s1563_s6 = inlined_call_operand.vmem [shape: f32[2,19,50], index: 6, kind: input, shape index: {}]   ;;  %s1564_s7 = inlined_call_operand.vmem [shape: f32[2,50], index: 7, kind: input, shape index: {}]   ;;  %s1565_s8 = inlined_call_operand.vmem [shape: f32[2,1,50], index: 8, kind: input, shape index: {}]   ;;  %s1566_s9 = inlined_call_operand.vmem [shape: f32[2,1], index: 9, kind: input, shape index: {}]   ;;  %s1567_s10 = inlined_call_operand.vmem [shape: f32[4,128], index: 10, kind: output, shape index: {}]  }
   0x1   :  { %s23_s15 = sshll.u32 %s1557_s0, 4  ;;  %s24_s15 = int_to_ptr.vmem [resolvable:$true] %s23_s15 }
   0x2   :  { %16 = vsyncpa [#allocation5], 0  ;;  %s33_s18 = sshll.u32 %s1558_s1, 4  ;;  %s1202_s19 = scalar_lea.vmem %s24_s15, 16  ;;  %s34_s18 = int_to_ptr.vmem [resolvable:$true] %s33_s18 }
   0x3   :  { %p1203_p0 = scmp.ne.s32.totalorder %s24_s15, %s1202_s19  ;;  %p1207_p1 = scmp.lt.s32.totalorder %s24_s15, %s24_s15 }
   0x4   :  { %p1208_p2 = scmp.lt.s32.totalorder %s1202_s19, %s1202_s19 }
   0x6   :  { %p1209_p3 = por %p1208_p2, %p1207_p1 }
   0x8   :  { %p1210_p4 = pnand %p1209_p3, %p1203_p0 }
   0xa   :  { %1213 = shalt.err (!%p1210_p4)
}
   0xb   :  { %s1230_s20 = smov [#allocation2]   ;;  %s1214_s21 = scalar_lea.vmem %s34_s18, 16 }
   0xc   :  { %26 = dma.vmem_to_smem %s24_s15, 16, %s1230_s20, [#allocation3]  }
   0xd   :  { %p1215_p5 = scmp.ne.s32.totalorder %s34_s18, %s1214_s21  ;;  %p1219_p6 = scmp.lt.s32.totalorder %s34_s18, %s34_s18 }
   0xe   :  { %p1220_p7 = scmp.lt.s32.totalorder %s1214_s21, %s1214_s21 }
  0x10   :  { %p1221_p8 = por %p1220_p7, %p1219_p6 }
  0x12   :  { %p1222_p9 = pnand %p1221_p8, %p1215_p5 }
  0x14   :  { %1225 = shalt.err (!%p1222_p9)
}
  0x15   :  { %s1231_s0 = smov [#allocation4]  }
  0x16   :  { %36 = dma.vmem_to_smem %s34_s18, 16, %s1231_s0, [#allocation5]  }
  0x17   :  { %1226 = dma.done.wait [#allocation3], 16  }
  0x18   :  { %1227 = vsyncadd [#allocation3], 4294967280 }
  0x19   :  { %1228 = dma.done.wait [#allocation5], 16  }
  0x1a   :  { %1229 = vsyncadd [#allocation5], 4294967280 }
  0x1b   :  { %59 = sfence }
  0x1c   :  { %s1064_s1 = sld [smem:[#allocation2 + $0xb]]  ;;  %s1053_s22 = sld [smem:[#allocation2 + $0x1]]  ;;  %v1305_v0 = vld [vmem:[%s1559_s2] sm:$0xf]  ;;  %v1352_v45 = vld [vmem:[%s1559_s2 + $0x4] sm:$0xf] }
  0x1d   :  { %s1054_s23 = sld [smem:[#allocation2 + $0x2]]  ;;  %s1058_s24 = sld [smem:[#allocation2 + $0x6]]  ;;  %vm101_vm0 = vcmask 486400   ;;  %vm837_vm1 = vcmask 1042432   ;;  %vm1239_vm2 = vmmov 0   ;;  %vm751_vm3 = vcmask 7168  }
  0x1e   :  { %s1070_s25 = sld [smem:[#allocation2 + $0x10]]  ;;  %s1059_s26 = sld [smem:[#allocation2 + $0x7]]  ;;  %vm753_vm4 = vcmask 15360   ;;  %vm755_vm5 = vcmask 23552   ;;  %vm757_vm6 = vcmask 31744   ;;  %vm759_vm7 = vcmask 39936  }
  0x1f   :  { %s1076_s29 = sld [smem:[#allocation2 + $0x15]]  ;;  %s1065_s30 = sld [smem:[#allocation2 + $0xc]]  ;;  %vm761_vm8 = vcmask 48128   ;;  %vm763_vm9 = vcmask 56320   ;;  %vm765_vm10 = vcmask 64512   ;;  %vm767_vm11 = vcmask 72704  }
  0x20   :  { %s1232_s11 = smov 127   ;;  %s1060_s12 = sld [smem:[#allocation2 + $0x8]]  ;;  %vm769_vm12 = vcmask 80896   ;;  %vm771_vm13 = vcmask 89088   ;;  %vm773_vm14 = vcmask 97280   ;;  %vm775_vm15 = vcmask 105472  }
  0x21   :  { %s1055_s13 = sld [smem:[#allocation2 + $0x3]]  ;;  %s1233_s14 = smov 126  }
  0x22   :  { %v153_v1 = vstv %s1064_s1  ;;  %v66_v3 = vstv %s1053_s22  ;;  %s1082_s15 = sld [smem:[#allocation2 + $0x1a]]  ;;  %s1071_s16 = sld [smem:[#allocation2 + $0x11]] }
  0x23   :  { %v154_v2 = vmul.f32 %v153_v1, %v1305_v0  ;;  %v74_v4 = vstv %s1054_s23  ;;  %v67_v5 = vmul.f32 %v66_v3, %v1305_v0  ;;  %v110_v6 = vstv %s1058_s24  ;;  %s1077_s17 = sld [smem:[#allocation2 + $0x16]]  ;;  %s1066_s18 = sld [smem:[#allocation2 + $0xd]] }
  0x24   :  { %v75_v7 = vmul.f32 %v74_v4, %v1305_v0  ;;  %v111_v8 = vmul.f32 %v110_v6, %v1305_v0  ;;  %v196_v9 = vstv %s1070_s25  ;;  %v118_v10 = vstv %s1059_s26  ;;  %s1056_s19 = sld [smem:[#allocation2 + $0x4]]  ;;  %s1088_s20 = sld [smem:[#allocation2 + $0x1f]] }
  0x25   :  { %156 = vrot.lane.b32.xlu1 %v154_v2, %s1232_s11  ;;  %69 = vrot.lane.b32.xlu0 %v67_v5, %s1232_s11  ;;  %v197_v11 = vmul.f32 %v196_v9, %v1305_v0  ;;  %v119_v12 = vmul.f32 %v118_v10, %v1305_v0  ;;  %v239_v13 = vstv %s1076_s29  ;;  %v161_v14 = vstv %s1065_s30  ;;  %s1234_s21 = smov 125   ;;  %s1072_s0 = sld [smem:[#allocation2 + $0x12]] }
  0x26   :  { %v240_v15 = vmul.f32 %v239_v13, %v1305_v0  ;;  %v162_v16 = vmul.f32 %v161_v14, %v1305_v0  ;;  %v126_v17 = vstv %s1060_s12  ;;  %s1061_s1 = sld [smem:[#allocation2 + $0x9]]  ;;  %s1094_s22 = sld [smem:[#allocation2 + $0x24]] }
  0x27   :  { %v82_v18 = vstv %s1055_s13  ;;  %v127_v19 = vmul.f32 %v126_v17, %v1305_v0  ;;  %s1083_s23 = sld [smem:[#allocation2 + $0x1b]]  ;;  %s1078_s24 = sld [smem:[#allocation2 + $0x17]] }
  0x28   :  { %v83_v20 = vmul.f32 %v82_v18, %v1305_v0  ;;  %v282_v21 = vstv %s1082_s15  ;;  %v204_v22 = vstv %s1071_s16  ;;  %s1067_s25 = sld [smem:[#allocation2 + $0xe]]  ;;  %s1235_s26 = smov 124  }
  0x29   :  { %77 = vrot.lane.b32.xlu1 %v75_v7, %s1233_s14  ;;  %113 = vrot.lane.b32.xlu0 %v111_v8, %s1232_s11  ;;  %v283_v23 = vmul.f32 %v282_v21, %v1305_v0  ;;  %v205_v24 = vmul.f32 %v204_v22, %v1305_v0  ;;  %v247_v25 = vstv %s1077_s17  ;;  %v169_v26 = vstv %s1066_s18  ;;  %s1100_s27 = sld [smem:[#allocation2 + $0x29]]  ;;  %s1089_s28 = sld [smem:[#allocation2 + $0x20]] }
  0x2a   :  { %v248_v27 = vmul.f32 %v247_v25, %v1305_v0  ;;  %v170_v28 = vmul.f32 %v169_v26, %v1305_v0  ;;  %v90_v29 = vstv %s1056_s19  ;;  %v325_v30 = vstv %s1088_s20  ;;  %s1084_s29 = sld [smem:[#allocation2 + $0x1c]]  ;;  %s1073_s30 = sld [smem:[#allocation2 + $0x13]] }
  0x2b   :  { %v91_v31 = vmul.f32 %v90_v29, %v1305_v0  ;;  %v326_v32 = vmul.f32 %v325_v30, %v1305_v0  ;;  %v212_v33 = vstv %s1072_s0  ;;  %s1106_s15 = sld [smem:[#allocation2 + $0x2e]]  ;;  %s1095_s16 = sld [smem:[#allocation2 + $0x25]] }
  0x2c   :  { %v134_v34 = vstv %s1061_s1  ;;  %v213_v35 = vmul.f32 %v212_v33, %v1305_v0  ;;  %v368_v37 = vstv %s1094_s22  ;;  %s1090_s17 = sld [smem:[#allocation2 + $0x21]]  ;;  %s1079_s18 = sld [smem:[#allocation2 + $0x18]] }
  0x2d   :  { %199 = vrot.lane.b32.xlu1 %v197_v11, %s1232_s11  ;;  %121 = vrot.lane.b32.xlu0 %v119_v12, %s1233_s14  ;;  %v135_v36 = vmul.f32 %v134_v34, %v1305_v0  ;;  %v290_v38 = vstv %s1083_s23  ;;  %v369_v39 = vmul.f32 %v368_v37, %v1305_v0  ;;  %v255_v41 = vstv %s1078_s24  ;;  %s1112_s2 = sld [smem:[#allocation2 + $0x33]]  ;;  %s1101_s19 = sld [smem:[#allocation2 + $0x2a]] }
  0x2e   :  { %v291_v40 = vmul.f32 %v290_v38, %v1305_v0  ;;  %v177_v42 = vstv %s1067_s25  ;;  %v256_v43 = vmul.f32 %v255_v41, %v1305_v0  ;;  %s1096_s20 = sld [smem:[#allocation2 + $0x26]]  ;;  %s1085_s0 = sld [smem:[#allocation2 + $0x1d]] }
  0x2f   :  { %v178_v44 = vmul.f32 %v177_v42, %v1305_v0  ;;  %v411_v46 = vstv %s1100_s27  ;;  %v333_v47 = vstv %s1089_s28  ;;  %s1118_s1 = sld [smem:[#allocation2 + $0x38]]  ;;  %s1107_s22 = sld [smem:[#allocation2 + $0x2f]] }
  0x30   :  { %v412_v48 = vmul.f32 %v411_v46, %v1352_v45  ;;  %v334_v49 = vmul.f32 %v333_v47, %v1305_v0  ;;  %v298_v50 = vstv %s1084_s29  ;;  %v220_v51 = vstv %s1073_s30  ;;  %s1102_s23 = sld [smem:[#allocation2 + $0x2b]]  ;;  %s1091_s24 = sld [smem:[#allocation2 + $0x22]] }
  0x31   :  { %242 = vrot.lane.b32.xlu1 %v240_v15, %s1232_s11  ;;  %164 = vrot.lane.b32.xlu0 %v162_v16, %s1233_s14  ;;  %v299_v52 = vmul.f32 %v298_v50, %v1305_v0  ;;  %v221_v53 = vmul.f32 %v220_v51, %v1305_v0  ;;  %v454_v54 = vstv %s1106_s15  ;;  %v376_v55 = vstv %s1095_s16  ;;  %s1124_s25 = sld [smem:[#allocation2 + $0x3d]]  ;;  %s1113_s27 = sld [smem:[#allocation2 + $0x34]] }
  0x32   :  { %v455_v56 = vmul.f32 %v454_v54, %v1352_v45  ;;  %v377_v57 = vmul.f32 %v376_v55, %v1305_v0  ;;  %v341_v58 = vstv %s1090_s17  ;;  %v263_v59 = vstv %s1079_s18  ;;  %s1108_s28 = sld [smem:[#allocation2 + $0x30]]  ;;  %s1097_s29 = sld [smem:[#allocation2 + $0x27]] }
  0x33   :  { %v342_v60 = vmul.f32 %v341_v58, %v1305_v0  ;;  %v264_v61 = vmul.f32 %v263_v59, %v1305_v0  ;;  %v497_v62 = vstv %s1112_s2  ;;  %v419_v63 = vstv %s1101_s19  ;;  %s1130_s30 = sld [smem:[#allocation2 + $0x42]]  ;;  %s1119_s12 = sld [smem:[#allocation2 + $0x39]] }
  0x34   :  { %v498_v1 = vmul.f32 %v497_v62, %v1352_v45  ;;  %v420_v2 = vmul.f32 %v419_v63, %v1352_v45  ;;  %v384_v3 = vstv %s1096_s20  ;;  %v306_v4 = vstv %s1085_s0  ;;  %s1114_s13 = sld [smem:[#allocation2 + $0x35]]  ;;  %s1103_s15 = sld [smem:[#allocation2 + $0x2c]] }
  0x35   :  { %129 = vrot.lane.b32.xlu1 %v127_v19, %s1234_s21  ;;  %85 = vrot.lane.b32.xlu0 %v83_v20, %s1234_s21  ;;  %v385_v5 = vmul.f32 %v384_v3, %v1305_v0  ;;  %v307_v6 = vmul.f32 %v306_v4, %v1305_v0  ;;  %v540_v7 = vstv %s1118_s1  ;;  %v462_v8 = vstv %s1107_s22  ;;  %s1136_s16 = sld [smem:[#allocation2 + $0x47]]  ;;  %s1125_s17 = sld [smem:[#allocation2 + $0x3e]] }
  0x36   :  { %v541_v9 = vmul.f32 %v540_v7, %v1352_v45  ;;  %v463_v10 = vmul.f32 %v462_v8, %v1352_v45  ;;  %v427_v11 = vstv %s1102_s23  ;;  %v349_v12 = vstv %s1091_s24  ;;  %s1120_s18 = sld [smem:[#allocation2 + $0x3a]]  ;;  %s1109_s2 = sld [smem:[#allocation2 + $0x31]] }
  0x37   :  { %v428_v13 = vmul.f32 %v427_v11, %v1352_v45  ;;  %v350_v14 = vmul.f32 %v349_v12, %v1305_v0  ;;  %v583_v15 = vstv %s1124_s25  ;;  %v505_v16 = vstv %s1113_s27  ;;  %s1142_s19 = sld [smem:[#allocation2 + $0x4c]]  ;;  %s1131_s20 = sld [smem:[#allocation2 + $0x43]] }
  0x38   :  { %v584_v17 = vmul.f32 %v583_v15, %v1352_v45  ;;  %v506_v18 = vmul.f32 %v505_v16, %v1352_v45  ;;  %v470_v19 = vstv %s1108_s28  ;;  %v392_v20 = vstv %s1097_s29  ;;  %s1126_s0 = sld [smem:[#allocation2 + $0x3f]]  ;;  %s1115_s1 = sld [smem:[#allocation2 + $0x36]] }
  0x39   :  { %285 = vrot.lane.b32.xlu1 %v283_v23, %s1232_s11  ;;  %207 = vrot.lane.b32.xlu0 %v205_v24, %s1233_s14  ;;  %v471_v21 = vmul.f32 %v470_v19, %v1352_v45  ;;  %v393_v22 = vmul.f32 %v392_v20, %v1305_v0  ;;  %v626_v23 = vstv %s1130_s30  ;;  %v548_v24 = vstv %s1119_s12  ;;  %s1121_s22 = sld [smem:[#allocation2 + $0x3b]]  ;;  %s1137_s23 = sld [smem:[#allocation2 + $0x48]] }
  0x3a   :  { %v627_v25 = vmul.f32 %v626_v23, %v1352_v45  ;;  %v549_v26 = vmul.f32 %v548_v24, %v1352_v45  ;;  %s1143_s24 = sld [smem:[#allocation2 + $0x4d]]  ;;  %s1132_s25 = sld [smem:[#allocation2 + $0x44]] }
  0x3b   :  { %s1138_s27 = sld [smem:[#allocation2 + $0x49]]  ;;  %s1127_s28 = sld [smem:[#allocation2 + $0x40]] }
  0x3c   :  { %s1133_s29 = sld [smem:[#allocation2 + $0x45]]  ;;  %s1145_s30 = sld [smem:[#allocation2 + $0x4f]] }
  0x3d   :  { %250 = vrot.lane.b32.xlu1 %v248_v27, %s1233_s14  ;;  %172 = vrot.lane.b32.xlu0 %v170_v28, %s1234_s21  ;;  %v513_v27 = vstv %s1114_s13  ;;  %v435_v28 = vstv %s1103_s15  ;;  %s1139_s12 = sld [smem:[#allocation2 + $0x4a]]  ;;  %s1057_s13 = sld [smem:[#allocation2 + $0x5]] }
  0x3e   :  { %v514_v29 = vmul.f32 %v513_v27, %v1352_v45  ;;  %v436_v30 = vmul.f32 %v435_v28, %v1352_v45  ;;  %s97_s15 = sld [smem:[#allocation4]] }
  0x41   :  { %93 = vrot.lane.b32.xlu1 %v91_v31, %s1235_s26  ;;  %328 = vrot.lane.b32.xlu0 %v326_v32, %s1232_s11  ;;  %v669_v31 = vstv %s1136_s16  ;;  %v591_v32 = vstv %s1125_s17  ;;  %s1069_s16 = sld [smem:[#allocation2 + $0xf]]  ;;  %s1068_s17 = sld [smem:[#allocation4 + $0x2]] }
  0x42   :  { %v670_v33 = vmul.f32 %v669_v31, %v1352_v45  ;;  %v592_v34 = vmul.f32 %v591_v32, %v1352_v45  ;;  %v650_v62 = vstv %s1133_s29  ;;  %v736_v3 = vstv %s1145_s30  ;;  %s1117_s29 = sld [smem:[#allocation2 + $0x37]]  ;;  %s1110_s30 = sld [smem:[#allocation4 + $0x9]] }
  0x43   :  { %v737_v7 = vmul.f32 %v736_v3, %v1352_v45 }
  0x44   :  { %v98_v32 = vstv %s97_s15  ;;  %s1494_s15 = sld [smem:[#allocation2 + $0x4b]] }
  0x45   :  { %215 = vrot.lane.b32.xlu1 %v213_v35, %s1234_s21  ;;  %137 = vrot.lane.b32.xlu0 %v135_v36, %s1235_s26  ;;  %v556_v35 = vstv %s1120_s18  ;;  %v478_v36 = vstv %s1109_s2  ;;  %s1075_s18 = sld [smem:[#allocation2 + $0x14]]  ;;  %s1074_s2 = sld [smem:[#allocation4 + $0x3]] }
  0x46   :  { %v557_v37 = vmul.f32 %v556_v35, %v1352_v45  ;;  %v479_v38 = vmul.f32 %v478_v36, %v1352_v45 }
  0x49   :  { %371 = vrot.lane.b32.xlu1 %v369_v39, %s1232_s11  ;;  %293 = vrot.lane.b32.xlu0 %v291_v40, %s1233_s14  ;;  %v712_v39 = vstv %s1142_s19  ;;  %v634_v40 = vstv %s1131_s20  ;;  %s1081_s19 = sld [smem:[#allocation2 + $0x19]]  ;;  %s1080_s20 = sld [smem:[#allocation4 + $0x4]] }
  0x4a   :  { %v713_v41 = vmul.f32 %v712_v39, %v1352_v45  ;;  %v635_v42 = vmul.f32 %v634_v40, %v1352_v45 }
  0x4d   :  { %258 = vrot.lane.b32.xlu1 %v256_v43, %s1234_s21  ;;  %180 = vrot.lane.b32.xlu0 %v178_v44, %s1235_s26  ;;  %v599_v43 = vstv %s1126_s0  ;;  %v521_v44 = vstv %s1115_s1  ;;  %s1087_s0 = sld [smem:[#allocation2 + $0x1e]]  ;;  %s1086_s1 = sld [smem:[#allocation4 + $0x5]] }
  0x4e   :  { %v600_v46 = vmul.f32 %v599_v43, %v1352_v45  ;;  %v522_v47 = vmul.f32 %v521_v44, %v1352_v45 }
  0x51   :  { %414 = vrot.lane.b32.xlu1 %v412_v48, %s1232_s11  ;;  %336 = vrot.lane.b32.xlu0 %v334_v49, %s1233_s14  ;;  %v564_v48 = vstv %s1121_s22  ;;  %v677_v49 = vstv %s1137_s23  ;;  %s1093_s22 = sld [smem:[#allocation2 + $0x23]]  ;;  %s1092_s23 = sld [smem:[#allocation4 + $0x6]] }
  0x52   :  { %v565_v50 = vmul.f32 %v564_v48, %v1352_v45  ;;  %v678_v51 = vmul.f32 %v677_v49, %v1352_v45 }
  0x55   :  { %301 = vrot.lane.b32.xlu1 %v299_v52, %s1234_s21  ;;  %223 = vrot.lane.b32.xlu0 %v221_v53, %s1235_s26  ;;  %v720_v52 = vstv %s1143_s24  ;;  %v642_v53 = vstv %s1132_s25  ;;  %s1099_s24 = sld [smem:[#allocation2 + $0x28]]  ;;  %s1098_s25 = sld [smem:[#allocation4 + $0x7]] }
  0x56   :  { %v721_v54 = vmul.f32 %v720_v52, %v1352_v45  ;;  %v643_v55 = vmul.f32 %v642_v53, %v1352_v45 }
  0x59   :  { %457 = vrot.lane.b32.xlu1 %v455_v56, %s1232_s11  ;;  %379 = vrot.lane.b32.xlu0 %v377_v57, %s1233_s14  ;;  %v685_v56 = vstv %s1138_s27  ;;  %v607_v57 = vstv %s1127_s28  ;;  %s1105_s27 = sld [smem:[#allocation2 + $0x2d]]  ;;  %s1104_s28 = sld [smem:[#allocation4 + $0x8]] }
  0x5a   :  { %v686_v58 = vmul.f32 %v685_v56, %v1352_v45  ;;  %v608_v59 = vmul.f32 %v607_v57, %v1352_v45 }
  0x5d   :  { %344 = vrot.lane.b32.xlu1 %v342_v60, %s1234_s21  ;;  %266 = vrot.lane.b32.xlu0 %v264_v61, %s1235_s26 }
  0x61   :  { %500 = vrot.lane.b32.xlu1 %v498_v1, %s1232_s11  ;;  %422 = vrot.lane.b32.xlu0 %v420_v2, %s1233_s14  ;;  %v651_v2 = vmul.f32 %v650_v62, %v1352_v45 }
  0x65   :  { %387 = vrot.lane.b32.xlu1 %v385_v5, %s1234_s21  ;;  %309 = vrot.lane.b32.xlu0 %v307_v6, %s1235_s26  ;;  %v693_v5 = vstv %s1139_s12  ;;  %s1123_s12 = sld [smem:[#allocation2 + $0x3c]] }
  0x66   :  { %v694_v8 = vmul.f32 %v693_v5, %v1352_v45  ;;  %v228_v5 = vstv %s1074_s2  ;;  %s1140_s2 = sld [smem:[#allocation4 + $0xe]] }
  0x69   :  { %543 = vrot.lane.b32.xlu1 %v541_v9, %s1232_s11  ;;  %465 = vrot.lane.b32.xlu0 %v463_v10, %s1233_s14 }
  0x6d   :  { %430 = vrot.lane.b32.xlu1 %v428_v13, %s1234_s21  ;;  %352 = vrot.lane.b32.xlu0 %v350_v14, %s1235_s26 }
  0x71   :  { %586 = vrot.lane.b32.xlu1 %v584_v17, %s1232_s11  ;;  %508 = vrot.lane.b32.xlu0 %v506_v18, %s1233_s14  ;;  %v107_v18 = vstv %s1057_s13  ;;  %s1122_s13 = sld [smem:[#allocation4 + $0xb]] }
  0x75   :  { %473 = vrot.lane.b32.xlu1 %v471_v21, %s1234_s21  ;;  %395 = vrot.lane.b32.xlu0 %v393_v22, %s1235_s26  ;;  %v108_v21 = vmul.f32 %v107_v18, %v1305_v0 }
  0x79   :  { %629 = vrot.lane.b32.xlu1 %v627_v25, %s1232_s11  ;;  %551 = vrot.lane.b32.xlu0 %v549_v26, %s1233_s14 }
  0x7d   :  { %516 = vrot.lane.b32.xlu1 %v514_v29, %s1234_s21  ;;  %438 = vrot.lane.b32.xlu0 %v436_v30, %s1235_s26 }
  0x81   :  { %672 = vrot.lane.b32.xlu1 %v670_v33, %s1232_s11  ;;  %594 = vrot.lane.b32.xlu0 %v592_v34, %s1233_s14 }
  0x85   :  { %559 = vrot.lane.b32.xlu1 %v557_v37, %s1234_s21  ;;  %481 = vrot.lane.b32.xlu0 %v479_v38, %s1235_s26 }
  0x89   :  { %715 = vrot.lane.b32.xlu1 %v713_v41, %s1232_s11  ;;  %637 = vrot.lane.b32.xlu0 %v635_v42, %s1233_s14  ;;  %s1144_s11 = sld [smem:[#allocation2 + $0x4e]]  ;;  %v193_v42 = vstv %s1069_s16  ;;  %s1128_s16 = sld [smem:[#allocation4 + $0xc]] }
  0x8a   :  { %v194_v48 = vmul.f32 %v193_v42, %v1305_v0 }
  0x8d   :  { %602 = vrot.lane.b32.xlu1 %v600_v46, %s1234_s21  ;;  %524 = vrot.lane.b32.xlu0 %v522_v47, %s1235_s26 }
  0x8f   :  { %v728_v60 = vstv %s1144_s11  ;;  %s1111_s11 = sld [smem:[#allocation2 + $0x32]] }
  0x90   :  { %v729_v1 = vmul.f32 %v728_v60, %v1352_v45 }
  0x91   :  { %567 = vrot.lane.b32.xlu1 %v565_v50, %s1235_s26  ;;  %680 = vrot.lane.b32.xlu0 %v678_v51, %s1233_s14  ;;  %v185_v51 = vstv %s1068_s17  ;;  %s1134_s17 = sld [smem:[#allocation4 + $0xd]] }
  0x95   :  { %723 = vrot.lane.b32.xlu1 %v721_v54, %s1233_s14  ;;  %645 = vrot.lane.b32.xlu0 %v643_v55, %s1234_s21  ;;  %s62_s14 = sld [smem:[#allocation2]] }
  0x97   :  { %v157_v61 = vpop.permute.xlu1 %156  ;;  %v70_v63 = vpop.permute.xlu0 %69 }
  0x99   :  { %688 = vrot.lane.b32.xlu1 %v686_v58, %s1234_s21  ;;  %610 = vrot.lane.b32.xlu0 %v608_v59, %s1235_s26  ;;  %v236_v59 = vstv %s1075_s18  ;;  %s1146_s18 = sld [smem:[#allocation4 + $0xf]] }
  0x9b   :  { %v78_v4 = vpop.permute.xlu1 %77  ;;  %v114_v6 = vpop.permute.xlu0 %113  ;;  %v63_v13 = vstv %s62_s14  ;;  %s1116_s14 = sld [smem:[#allocation4 + $0xa]] }
  0x9c   :  { %v64_v16 = vmul.f32 %v63_v13, %v1305_v0  ;;  %v116_v26 = vadd.f32 %v114_v6, %v108_v21  ;;  %v271_v21 = vstv %s1080_s20 }
  0x9d   :  { %731 = vrot.lane.b32.xlu1 %v729_v1, %s1234_s21  ;;  %653 = vrot.lane.b32.xlu0 %v651_v2, %s1235_s26  ;;  %s1063_s21 = sld [smem:[#allocation2 + $0xa]]  ;;  %v237_v1 = vmul.f32 %v236_v59, %v1305_v0 }
  0x9e   :  { %v72_v20 = vadd.f32 %v70_v63, %v64_v16 }
  0x9f   :  { %v200_v9 = vpop.permute.xlu1 %199  ;;  %v122_v10 = vpop.permute.xlu0 %121 }
  0xa0   :  { %v80_v23 = vadd.f32 %v78_v4, %v72_v20  ;;  %v124_v31 = vadd.f32 %v122_v10, %v116_v26  ;;  %v202_v56 = vadd.f32 %v200_v9, %v194_v48 }
  0xa1   :  { %739 = vrot.lane.b32.xlu1 %v737_v7, %s1235_s26  ;;  %696 = vrot.lane.b32.xlu0 %v694_v8, %s1235_s26  ;;  %s1062_s26 = sld [smem:[#allocation4 + $0x1]] }
  0xa3   :  { %v1440_v11 = vpop.permute.xlu1 %242  ;;  %v165_v12 = vpop.permute.xlu0 %164  ;;  %v150_v28 = vstv %s1063_s21  ;;  %s1129_s21 = sld [smem:[#allocation2 + $0x41]] }
  0xa4   :  { %v151_v33 = vmul.f32 %v150_v28, %v1305_v0  ;;  %v245_v8 = vadd.f32 %v1440_v11, %v237_v1 }
  0xa6   :  { %v159_v40 = vadd.f32 %v157_v61, %v151_v33 }
  0xa7   :  { %v130_v14 = vpop.permute.xlu1 %129  ;;  %v86_v15 = vpop.permute.xlu0 %85  ;;  %v142_v38 = vstv %s1062_s26  ;;  %s1135_s26 = sld [smem:[#allocation2 + $0x46]] }
  0xa8   :  { %v88_v25 = vadd.f32 %v86_v15, %v80_v23  ;;  %v132_v34 = vadd.f32 %v130_v14, %v124_v31  ;;  %v167_v47 = vadd.f32 %v165_v12, %v159_v40  ;;  %v279_v12 = vstv %s1081_s19 }
  0xa9   :  { %v280_v16 = vmul.f32 %v279_v12, %v1305_v0  ;;  %v365_v40 = vstv %s1093_s22 }
  0xab   :  { %v1443_v17 = vpop.permute.xlu1 %285  ;;  %v208_v19 = vpop.permute.xlu0 %207 }
  0xac   :  { %v210_v62 = vadd.f32 %v208_v19, %v202_v56 }
  0xaf   :  { %v1446_v22 = vpop.permute.xlu1 %250  ;;  %v173_v24 = vpop.permute.xlu0 %172 }
  0xb0   :  { %v175_v49 = vadd.f32 %v173_v24, %v167_v47  ;;  %v253_v14 = vadd.f32 %v1446_v22, %v245_v8  ;;  %v288_v24 = vadd.f32 %v1443_v17, %v280_v16 }
  0xb3   :  { %v94_v27 = vpop.permute.xlu1 %93  ;;  %v1448_v30 = vpop.permute.xlu0 %328 }
  0xb4   :  { %v96_v29 = vadd.f32 %v94_v27, %v88_v25  ;;  %v322_v27 = vstv %s1087_s0  ;;  %s1236_s0 = smov 16  }
  0xb5   :  { %v323_v31 = vmul.f32 %v322_v27, %v1305_v0  ;;  %v537_v27 = vstv %s1117_s29 }
  0xb6   :  { %v99_v36 = vadd.f32 %v98_v32, %v96_v29 }
  0xb7   :  { %v216_v35 = vpop.permute.xlu1 %215  ;;  %v138_v37 = vpop.permute.xlu0 %137  ;;  %v331_v17 = vadd.f32 %v1448_v30, %v323_v31  ;;  %v486_v31 = vstv %s1110_s30 }
  0xb8   :  { %v140_v39 = vadd.f32 %v138_v37, %v132_v34  ;;  %v100_v46 = vmax.f32 %v99_v36, 0.0  ;;  %v218_v2 = vadd.f32 %v216_v35, %v210_v62  ;;  %v314_v35 = vstv %s1086_s1 }
  0xba   :  { %v143_v43 = vadd.f32 %v142_v38, %v140_v39  ;;  %v102_v53 = vsel %vm101_vm0, %v100_v46, 0.0  ;;  %v366_v46 = vmul.f32 %v365_v40, %v1305_v0 }
  0xbb   :  { %v1451_v41 = vpop.permute.xlu1 %371  ;;  %v294_v44 = vpop.permute.xlu0 %293 }
  0xbc   :  { %v144_v54 = vmax.f32 %v143_v43, 0.0  ;;  %v296_v28 = vadd.f32 %v294_v44, %v288_v24  ;;  %v374_v30 = vadd.f32 %v1451_v41, %v366_v46  ;;  %v580_v46 = vstv %s1123_s12 }
  0xbe   :  { %v145_v61 = vsel %vm101_vm0, %v144_v54, 0.0 }
  0xbf   :  { %v259_v50 = vpop.permute.xlu1 %258  ;;  %v181_v52 = vpop.permute.xlu0 %180 }
  0xc0   :  { %v183_v55 = vadd.f32 %v181_v52, %v175_v49  ;;  %103 = vadd.xlane.f32.xlu0 %v102_v53  ;;  %v261_v18 = vadd.f32 %v259_v50, %v253_v14  ;;  %v357_v50 = vstv %s1092_s23 }
  0xc2   :  { %v186_v57 = vadd.f32 %v185_v51, %v183_v55  ;;  %v408_v55 = vstv %s1099_s24 }
  0xc3   :  { %v1455_v58 = vpop.permute.xlu1 %414  ;;  %v337_v60 = vpop.permute.xlu0 %336  ;;  %v409_v0 = vmul.f32 %v408_v55, %v1352_v45 }
  0xc4   :  { %v187_v63 = vmax.f32 %v186_v57, 0.0  ;;  %v339_v43 = vadd.f32 %v337_v60, %v331_v17 }
  0xc5   :  { %146 = vadd.xlane.f32.xlu1 %v145_v61  ;;  %v417_v41 = vadd.f32 %v1455_v58, %v409_v0 }
  0xc6   :  { %v188_v4 = vsel %vm101_vm0, %v187_v63, 0.0  ;;  %v400_v63 = vstv %s1098_s25 }
  0xc7   :  { %v302_v3 = vpop.permute.xlu1 %301  ;;  %v224_v6 = vpop.permute.xlu0 %223  ;;  %189 = vadd.xlane.f32.xlu0 %v188_v4 }
  0xc8   :  { %v226_v7 = vadd.f32 %v224_v6, %v218_v2  ;;  %v304_v32 = vadd.f32 %v302_v3, %v296_v28 }
  0xca   :  { %v229_v9 = vadd.f32 %v228_v5, %v226_v7  ;;  %v451_v5 = vstv %s1105_s27 }
  0xcb   :  { %v1461_v10 = vpop.permute.xlu1 %457  ;;  %v380_v13 = vpop.permute.xlu0 %379 }
  0xcc   :  { %v230_v15 = vmax.f32 %v229_v9, 0.0  ;;  %v382_v57 = vadd.f32 %v380_v13, %v374_v30  ;;  %v452_v9 = vmul.f32 %v451_v5, %v1352_v45  ;;  %v572_v30 = vstv %s1122_s13 }
  0xce   :  { %v231_v20 = vsel %vm101_vm0, %v230_v15, 0.0  ;;  %v443_v15 = vstv %s1104_s28 }
  0xcf   :  { %v345_v19 = vpop.permute.xlu1 %344  ;;  %v267_v23 = vpop.permute.xlu0 %266  ;;  %232 = vadd.xlane.f32.xlu0 %v231_v20 }
  0xd0   :  { %v269_v11 = vadd.f32 %v267_v23, %v261_v18  ;;  %v347_v47 = vadd.f32 %v345_v19, %v339_v43  ;;  %v460_v18 = vadd.f32 %v1461_v10, %v452_v9 }
  0xd2   :  { %v272_v25 = vadd.f32 %v271_v21, %v269_v11  ;;  %v494_v21 = vstv %s1111_s11 }
  0xd3   :  { %v1467_v26 = vpop.permute.xlu1 %500  ;;  %v423_v22 = vpop.permute.xlu0 %422 }
  0xd4   :  { %v273_v29 = vmax.f32 %v272_v25, 0.0  ;;  %v425_v7 = vadd.f32 %v423_v22, %v417_v41  ;;  %v495_v25 = vmul.f32 %v494_v21, %v1352_v45 }
  0xd6   :  { %v274_v34 = vsel %vm101_vm0, %v273_v29, 0.0 }
  0xd7   :  { %v388_v33 = vpop.permute.xlu1 %387  ;;  %275 = vadd.xlane.f32.xlu1 %v274_v34  ;;  %v310_v36 = vpop.permute.xlu0 %309  ;;  %v503_v34 = vadd.f32 %v1467_v26, %v495_v25 }
  0xd8   :  { %v312_v37 = vadd.f32 %v310_v36, %v304_v32  ;;  %v390_v60 = vadd.f32 %v388_v33, %v382_v57  ;;  %v538_v33 = vmul.f32 %v537_v27, %v1352_v45 }
  0xda   :  { %v315_v38 = vadd.f32 %v314_v35, %v312_v37 }
  0xdb   :  { %v1472_v39 = vpop.permute.xlu1 %543  ;;  %v466_v42 = vpop.permute.xlu0 %465 }
  0xdc   :  { %v316_v44 = vmax.f32 %v315_v38, 0.0  ;;  %v468_v11 = vadd.f32 %v466_v42, %v460_v18  ;;  %v546_v40 = vadd.f32 %v1472_v39, %v538_v33  ;;  %v701_v33 = vstv %s1140_s2  ;;  %s1240_s2 = smov 1  }
  0xde   :  { %v317_v49 = vsel %vm101_vm0, %v316_v44, 0.0 }
  0xdf   :  { %v431_v48 = vpop.permute.xlu1 %430  ;;  %v353_v51 = vpop.permute.xlu0 %352  ;;  %318 = vadd.xlane.f32.xlu0 %v317_v49 }
  0xe0   :  { %v355_v52 = vadd.f32 %v353_v51, %v347_v47  ;;  %v433_v12 = vadd.f32 %v431_v48, %v425_v7  ;;  %v529_v48 = vstv %s1116_s14  ;;  %v581_v51 = vmul.f32 %v580_v46, %v1352_v45  ;;  %v826_v46 = vld [vmem:[%s1563_s6] sm:$0xff] }
  0xe2   :  { %v358_v53 = vadd.f32 %v357_v50, %v355_v52 }
  0xe3   :  { %v1477_v54 = vpop.permute.xlu1 %586  ;;  %v509_v56 = vpop.permute.xlu0 %508 }
  0xe4   :  { %v359_v59 = vmax.f32 %v358_v53, 0.0  ;;  %v511_v17 = vadd.f32 %v509_v56, %v503_v34  ;;  %v623_v53 = vstv %s1129_s21  ;;  %v589_v0 = vadd.f32 %v1477_v54, %v581_v51 }
  0xe6   :  { %v360_v62 = vsel %vm101_vm0, %v359_v59, 0.0 }
  0xe7   :  { %v474_v61 = vpop.permute.xlu1 %473  ;;  %361 = vadd.xlane.f32.xlu1 %v360_v62  ;;  %v396_v1 = vpop.permute.xlu0 %395 }
  0xe8   :  { %v398_v2 = vadd.f32 %v396_v1, %v390_v60  ;;  %v476_v22 = vadd.f32 %v474_v61, %v468_v11  ;;  %v624_v60 = vmul.f32 %v623_v53, %v1352_v45  ;;  %v709_v61 = vstv %s1494_s15 }
  0xe9   :  { %v666_v1 = vstv %s1135_s26  ;;  %v710_v5 = vmul.f32 %v709_v61, %v1352_v45  ;;  %v658_v11 = vstv %s1134_s17 }
  0xea   :  { %v401_v3 = vadd.f32 %v400_v63, %v398_v2  ;;  %v667_v54 = vmul.f32 %v666_v1, %v1352_v45 }
  0xeb   :  { %v1482_v4 = vpop.permute.xlu1 %629  ;;  %v552_v6 = vpop.permute.xlu0 %551 }
  0xec   :  { %v402_v8 = vmax.f32 %v401_v3, 0.0  ;;  %v554_v47 = vadd.f32 %v552_v6, %v546_v40  ;;  %v632_v7 = vadd.f32 %v1482_v4, %v624_v60 }
  0xee   :  { %v403_v14 = vsel %vm101_vm0, %v402_v8, 0.0 }
  0xef   :  { %v517_v13 = vpop.permute.xlu1 %516  ;;  %v439_v16 = vpop.permute.xlu0 %438  ;;  %404 = vadd.xlane.f32.xlu0 %v403_v14 }
  0xf0   :  { %v441_v58 = vadd.f32 %v439_v16, %v433_v12  ;;  %v519_v42 = vadd.f32 %v517_v13, %v511_v17  ;;  %v615_v12 = vstv %s1128_s16 }
  0xf2   :  { %v444_v19 = vadd.f32 %v443_v15, %v441_v58 }
  0xf3   :  { %v1487_v20 = vpop.permute.xlu1 %672  ;;  %v595_v23 = vpop.permute.xlu0 %594 }
  0xf4   :  { %v445_v24 = vmax.f32 %v444_v19, 0.0  ;;  %v597_v3 = vadd.f32 %v595_v23, %v589_v0  ;;  %v675_v58 = vadd.f32 %v1487_v20, %v667_v54 }
  0xf6   :  { %v446_v29 = vsel %vm101_vm0, %v445_v24, 0.0 }
  0xf7   :  { %v560_v28 = vpop.permute.xlu1 %559  ;;  %447 = vadd.xlane.f32.xlu1 %v446_v29  ;;  %v482_v32 = vpop.permute.xlu0 %481  ;;  %v744_v29 = vstv %s1146_s18 }
  0xf8   :  { %v484_v10 = vadd.f32 %v482_v32, %v476_v22  ;;  %v562_v50 = vadd.f32 %v560_v28, %v554_v47  ;;  %v827_v47 = vld [vmem:[%s1563_s6 + $0x8] sm:$0xff] }
  0xfa   :  { %v487_v35 = vadd.f32 %v486_v31, %v484_v10 }
  0xfb   :  { %v716_v36 = vpop.permute.xlu1 %715  ;;  %v638_v37 = vpop.permute.xlu0 %637 }
  0xfc   :  { %v488_v38 = vmax.f32 %v487_v35, 0.0  ;;  %v640_v14 = vadd.f32 %v638_v37, %v632_v7  ;;  %v718_v16 = vadd.f32 %v716_v36, %v710_v5 }
  0xfe   :  { %v489_v44 = vsel %vm101_vm0, %v488_v38, 0.0 }
  0xff   :  { %v603_v43 = vpop.permute.xlu1 %602  ;;  %v525_v26 = vpop.permute.xlu0 %524  ;;  %490 = vadd.xlane.f32.xlu0 %v489_v44  ;;  %v781_v44 = vld [vmem:[%s1560_s3] sm:$0xf] }
 0x100   :  { %v527_v49 = vadd.f32 %v525_v26, %v519_v42  ;;  %v605_v8 = vadd.f32 %v603_v43, %v597_v3  ;;  %v1184_v26 = vpack.c.bf16 %v827_v47, %v826_v46 }
 0x102   :  { %v530_v52 = vadd.f32 %v529_v48, %v527_v49  ;;  %v1150_v48 = vld [vmem:[%s1563_s6 + $0x18] sm:$0xff]  ;;  %v1151_v49 = vld [vmem:[%s1563_s6 + $0x20] sm:$0xff] }
 0x103   :  { %v568_v39 = vpop.permute.xlu1 %567  ;;  %v681_v56 = vpop.permute.xlu0 %680  ;;  %v1187_v51 = vpack.c.bf16 %v1151_v49, %v1150_v48 }
 0x104   :  { %v570_v55 = vadd.f32 %v568_v39, %v562_v50  ;;  %v531_v57 = vmax.f32 %v530_v52, 0.0  ;;  %v683_v24 = vadd.f32 %v681_v56, %v675_v58  ;;  %v1237_v50 = vmov 0.0|0.0   ;;  %v1152_v39 = vld [vmem:[%s1563_s6 + $0x28] sm:$0x7] }
 0x105   :  { %1183 = vmatprep.subr.bf16.mxu0 %v1237_v50  ;;  %1186 = vmatprep.subr.bf16.mxu1 %v1237_v50  ;;  %v1238_v52 = vmov 0.0  }
 0x106   :  { %v573_v59 = vadd.f32 %v572_v30, %v570_v55  ;;  %v532_v63 = vsel %vm101_vm0, %v531_v57, 0.0  ;;  %1185 = vmatpush3.bf16.msra.mxu0 %v1184_v26  ;;  %1188 = vmatpush3.bf16.msra.mxu1 %v1187_v51  ;;  %v828_v30 = vld [vmem:[%s1563_s6 + $0x10] sm:$0x7] }
 0x107   :  { %v724_v62 = vpop.permute.xlu1 %723  ;;  %533 = vadd.xlane.f32.xlu1 %v532_v63  ;;  %v646_v2 = vpop.permute.xlu0 %645  ;;  %1169 = vmatprep.subr.mxu0 %v1238_v52 }
 0x108   :  { %v574_v41 = vmax.f32 %v573_v59, 0.0  ;;  %v648_v18 = vadd.f32 %v646_v2, %v640_v14  ;;  %v726_v23 = vadd.f32 %v724_v62, %v718_v16  ;;  %1178 = vmatprep.subr.mxu1 %v1238_v52  ;;  %1171 = vmatprep.mubr.msk.f32.mxu0 %vm1239_vm2, %v1238_v52 }
 0x109   :  { %1180 = vmatprep.mubr.msk.f32.mxu1 %vm1239_vm2, %v1238_v52  ;;  %vm786_vm2 = vcmask 130048  }
 0x10a   :  { %v575_v6 = vsel %vm101_vm0, %v574_v41, 0.0  ;;  %1170 = vmatpush3.msk.msra.mxu0 %vm837_vm1, %v828_v30  ;;  %1179 = vmatpush3.msk.msra.mxu1 %vm837_vm1, %v1152_v39  ;;  %vm779_vm1 = vcmask 121856  }
 0x10b   :  { %v689_v9 = vpop.permute.xlu1 %688  ;;  %576 = vadd.xlane.f32.xlu0 %v575_v6  ;;  %v611_v13 = vpop.permute.xlu0 %610 }
 0x10c   :  { %v613_v15 = vadd.f32 %v611_v13, %v605_v8  ;;  %v691_v22 = vadd.f32 %v689_v9, %v683_v24 }
 0x10e   :  { %v616_v19 = vadd.f32 %v615_v12, %v613_v15 }
 0x10f   :  { %v732_v21 = vpop.permute.xlu1 %731  ;;  %v654_v4 = vpop.permute.xlu0 %653 }
 0x110   :  { %v656_v45 = vadd.f32 %v654_v4, %v648_v18  ;;  %v617_v25 = vmax.f32 %v616_v19, 0.0  ;;  %v734_v27 = vadd.f32 %v732_v21, %v726_v23 }
 0x112   :  { %v659_v28 = vadd.f32 %v658_v11, %v656_v45  ;;  %v618_v32 = vsel %vm101_vm0, %v617_v25, 0.0 }
 0x113   :  { %v740_v31 = vpop.permute.xlu1 %739  ;;  %619 = vadd.xlane.f32.xlu1 %v618_v32  ;;  %v697_v20 = vpop.permute.xlu0 %696 }
 0x114   :  { %v742_v10 = vadd.f32 %v740_v31, %v734_v27  ;;  %v699_v34 = vadd.f32 %v697_v20, %v691_v22  ;;  %v660_v35 = vmax.f32 %v659_v28, 0.0 }
 0x116   :  { %v745_v36 = vadd.f32 %v744_v29, %v742_v10  ;;  %v702_v37 = vadd.f32 %v701_v33, %v699_v34  ;;  %v661_v17 = vsel %vm101_vm0, %v660_v35, 0.0 }
 0x117   :  { %662 = vadd.xlane.f32.xlu0 %v661_v17 }
 0x118   :  { %v746_v38 = vmax.f32 %v745_v36, 0.0  ;;  %v703_v40 = vmax.f32 %v702_v37, 0.0 }
 0x11a   :  { %v747_v42 = vsel %vm101_vm0, %v746_v38, 0.0  ;;  %v704_v43 = vsel %vm101_vm0, %v703_v40, 0.0  ;;  %vm777_vm0 = vcmask 113664  }
 0x11b   :  { %705 = vadd.xlane.f32.xlu1 %v704_v43  ;;  %748 = vadd.xlane.f32.xlu0 %v747_v42 }
 0x12c   :  { %783 = vrot.lane.b32.xlu1 %v781_v44, %s1236_s0 }
 0x14d   :  { %v104_v53 = vpop.xlane.xlu0 %103 }
 0x14e   :  { %v105_v63 = vmul.f32 0.016666668, %v104_v53 }
 0x152   :  { %v147_v56 = vpop.xlane.xlu1 %146 }
 0x153   :  { %v148_v61 = vmul.f32 0.016666668, %v147_v56 }
 0x154   :  { %v190_v55 = vpop.xlane.xlu0 %189 }
 0x155   :  { %v191_v2 = vmul.f32 0.016666668, %v190_v55  ;;  %v752_v41 = vsel %vm751_vm3, %v105_v63, %v148_v61  ;;  %v812_v63 = vld [vmem:[%s1562_s5] sm:$0x3] }
 0x157   :  { %v754_v8 = vsel %vm753_vm4, %v752_v41, %v191_v2 }
 0x15c   :  { %v233_v57 = vpop.xlane.xlu0 %232 }
 0x15d   :  { %v234_v3 = vmul.f32 0.016666668, %v233_v57  ;;  %v815_v57 = vlaneseq }
 0x15f   :  { %v756_v12 = vsel %vm755_vm5, %v754_v8, %v234_v3  ;;  %vm788_vm5 = vcmask 150528  }
 0x164   :  { %v276_v59 = vpop.xlane.xlu1 %275 }
 0x165   :  { %v277_v6 = vmul.f32 0.016666668, %v276_v59 }
 0x167   :  { %v758_v15 = vsel %vm757_vm6, %v756_v12, %v277_v6  ;;  %vm833_vm6 = vcmask 154624  }
 0x16c   :  { %v319_v0 = vpop.xlane.xlu0 %318 }
 0x16d   :  { %v320_v7 = vmul.f32 0.016666668, %v319_v0  ;;  %v816_v0 = vshrl.u32 %v815_v57, 7 }
 0x16f   :  { %v760_v58 = vsel %vm759_vm7, %v758_v15, %v320_v7  ;;  %v930_v61 = vsub.s32 1, %v816_v0  ;;  %vm919_vm7 = vcmask 404480  }
 0x171   :  { %v936_v6 = vrot.slane %v812_v63, %v930_v61 }
 0x174   :  { %v362_v60 = vpop.xlane.xlu1 %361 }
 0x175   :  { %v363_v9 = vmul.f32 0.016666668, %v362_v60  ;;  %v817_v60 = vsub.s32 0, %v816_v0 }
 0x177   :  { %v762_v21 = vsel %vm761_vm8, %v760_v58, %v363_v9 }
 0x17c   :  { %v405_v62 = vpop.xlane.xlu0 %404 }
 0x17d   :  { %v406_v13 = vmul.f32 0.016666668, %v405_v62  ;;  %v811_v62 = vld [vmem:[%s1561_s4] sm:$0x3] }
 0x17e   :  { %v931_v2 = vrot.slane %v811_v62, %v930_v61 }
 0x17f   :  { %v764_v11 = vsel %vm763_vm9, %v762_v21, %v406_v13 }
 0x184   :  { %v448_v1 = vpop.xlane.xlu1 %447 }
 0x185   :  { %v449_v16 = vmul.f32 0.016666668, %v448_v1  ;;  %v818_v1 = vrot.slane %v811_v62, %v817_v60 }
 0x187   :  { %v766_v45 = vsel %vm765_vm10, %v764_v11, %v449_v16 }
 0x18c   :  { %v491_v5 = vpop.xlane.xlu0 %490 }
 0x18d   :  { %v492_v18 = vmul.f32 0.016666668, %v491_v5  ;;  %v823_v5 = vrot.slane %v812_v63, %v817_v60 }
 0x18f   :  { %v768_v27 = vsel %vm767_vm11, %v766_v45, %v492_v18 }
 0x194   :  { %v534_v54 = vpop.xlane.xlu1 %533 }
 0x195   :  { %v535_v23 = vmul.f32 0.016666668, %v534_v54 }
 0x197   :  { %v770_v28 = vsel %vm769_vm12, %v768_v27, %v535_v23 }
 0x198   :  { %v577_v14 = vpop.xlane.xlu0 %576 }
 0x199   :  { %v578_v4 = vmul.f32 0.016666668, %v577_v14  ;;  %v813_v14 = vld [vmem:[%s1564_s7] sm:$0x3] }
 0x19a   :  { %v832_v15 = vrot.slane %v813_v14, %v817_v60  ;;  %v946_v16 = vrot.slane %v813_v14, %v930_v61 }
 0x19b   :  { %v772_v29 = vsel %vm771_vm13, %v770_v28, %v578_v4  ;;  %v814_v28 = vld [vmem:[%s1566_s9] sm:$0x3] }
 0x1a0   :  { %v620_v19 = vpop.xlane.xlu1 %619 }
 0x1a1   :  { %v621_v25 = vmul.f32 0.016666668, %v620_v19  ;;  %v1149_v19 = vld [vmem:[%s1565_s8] ss:$0 sm:$0xff] }
 0x1a3   :  { %v774_v10 = vsel %vm773_vm14, %v772_v29, %v621_v25 }
 0x1a4   :  { %v663_v24 = vpop.xlane.xlu0 %662 }
 0x1a5   :  { %v664_v22 = vmul.f32 0.016666668, %v663_v24  ;;  %v1156_v24 = vld [vmem:[%s1565_s8 + $0x1] ss:$0 sm:$0xff] }
 0x1a7   :  { %v776_v34 = vsel %vm775_vm15, %v774_v10, %v664_v22 }
 0x1a8   :  { %v706_v31 = vpop.xlane.xlu1 %705  ;;  %v749_v32 = vpop.xlane.xlu0 %748 }
 0x1a9   :  { %v707_v33 = vmul.f32 0.016666668, %v706_v31  ;;  %v750_v20 = vmul.f32 0.016666668, %v749_v32  ;;  %v1038_v31 = vrot.slane %v814_v28, %v930_v61 }
 0x1ab   :  { %v778_v35 = vsel %vm777_vm0, %v776_v34, %v707_v33  ;;  %v926_v33 = vrot.slane %v814_v28, %v817_v60 }
 0x1ac   :  { %v784_v36 = vpop.permute.xlu1 %783  ;;  %v780_v37 = vsel %vm779_vm1, %v778_v35, %v750_v20 }
 0x1ad   :  { %v787_v17 = vsel %vm786_vm2, %v780_v37, %v784_v36 }
 0x1ae   :  { %v789_v38 = vsel %vm788_vm5, %v787_v17, 0.0 }
 0x1af   :  { %v790_v40 = vrot.slane %v789_v38, 4 }
 0x1b1   :  { %v791_v42 = vadd.f32 %v790_v40, %v789_v38 }
 0x1b3   :  { %v792_v43 = vrot.slane %v791_v42, 2 }
 0x1b5   :  { %v793_v44 = vadd.f32 %v792_v43, %v791_v42 }
 0x1b7   :  { %v794_v46 = vrot.slane %v793_v44, 1 }
 0x1b9   :  { %v795_v47 = vadd.f32 %v794_v46, %v793_v44 }
 0x1bb   :  { %v797_v48 = vmul.f32 0.25, %v795_v47 }
 0x1bd   :  { %v798_v26 = vsub.f32 %v787_v17, %v797_v48 }
 0x1bf   :  { %v799_v49 = vmul.f32 %v798_v26, %v798_v26 }
 0x1c1   :  { %v800_v50 = vsel %vm788_vm5, %v799_v49, 0.0 }
 0x1c2   :  { %v801_v51 = vrot.slane %v800_v50, 4 }
 0x1c4   :  { %v802_v52 = vadd.f32 %v801_v51, %v800_v50 }
 0x1c6   :  { %v803_v30 = vrot.slane %v802_v52, 2 }
 0x1c8   :  { %v804_v39 = vadd.f32 %v803_v30, %v802_v52 }
 0x1ca   :  { %v805_v53 = vrot.slane %v804_v39, 1 }
 0x1cc   :  { %v806_v55 = vadd.f32 %v805_v53, %v804_v39 }
 0x1ce   :  { %v807_v56 = vmul.f32 0.25, %v806_v55 }
 0x1d0   :  { %v808_v59 = vadd.f32 1e-05, %v807_v56 }
 0x1d2   :  { %1200 = vrsqrt.f32 %v808_v59 }
 0x1dc   :  { %v1201_v41 = vpop.eup %1200 }
 0x1dd   :  { %v810_v3 = vmul.f32 %v1201_v41, %v798_v26 }
 0x1df   :  { %v819_v7 = vmul.f32 %v818_v1, %v810_v3  ;;  %v932_v54 = vmul.f32 %v931_v2, %v810_v3 }
 0x1e1   :  { %v824_v8 = vadd.f32 %v823_v5, %v819_v7  ;;  %v937_v9 = vadd.f32 %v936_v6, %v932_v54 }
 0x1e3   :  { %v825_v12 = vmax.f32 %v824_v8, 0.0  ;;  %v938_v13 = vmax.f32 %v937_v9, 0.0 }
 0x1e5   :  { %1172 = vmatmul.mubr.msk.f32.vlgmr.msra.gmra.mrb[0].mxu0 %vm833_vm6, %v825_v12  ;;  %1181 = vmatmul.mubr.msk.f32.vlgmr.msra.gmra.mrb[0].mxu1 %vm833_vm6, %v938_v13 }
 0x2b8   :  { %v907_v58 = vpop.f32.mrb[0].mxu0  ;;  %v1019_v18 = vpop.f32.mrb[0].mxu1 }
 0x2b9   :  { %v908_v21 = vadd.f32 %v907_v58, %v832_v15  ;;  %v1020_v23 = vadd.f32 %v1019_v18, %v946_v16  ;;  %v1173_v11 = vpop.f32.mrb[1].mxu0  ;;  %v1182_v4 = vpop.f32.mrb[1].mxu1 }
 0x2bb   :  { %v918_v45 = vmul.f32 %v1149_v19, %v908_v21  ;;  %v1031_v27 = vmul.f32 %v1156_v24, %v1020_v23 }
 0x2bd   :  { %v920_v25 = vsel %vm919_vm7, %v918_v45, 0.0  ;;  %v1032_v22 = vsel %vm919_vm7, %v1031_v27, 0.0 }
 0x2be   :  { %921 = vadd.xlane.f32.xlu0 %v920_v25 }
 0x2c2   :  { %1033 = vadd.xlane.f32.xlu0 %v1032_v22 }
 0x34b   :  { %v922_v29 = vpop.xlane.xlu0 %921 }
 0x34c   :  { %v927_v20 = vadd.f32 %v926_v33, %v922_v29 }
 0x34f   :  { %v1034_v32 = vpop.xlane.xlu0 %1033 }
 0x350   :  { %v1039_v10 = vadd.f32 %v1038_v31, %v1034_v32 }
 0x352   :  { %1041 = vrot.lane.b32.xlu0 %v1039_v10, %s1240_s2 }
 0x3c4   :  { %v1042_v34 = vpop.permute.xlu0 %1041 }
 0x3c5   :  { %v1044_v35 = vsel %vm751_vm3, %v927_v20, %v1042_v34 }
 0x3c6   :  { %v1045_v36 = vsel %vm753_vm4, %v1044_v35, 0.0 }
 0x3c7   :  { %1046 = vst [vmem:[%s1567_s10] sm:$0xf] %v1045_v36 }
 0x3c8   :  { %1051 = vsyncpa [#allocation3], 1 }
 0x3c9   :  { %1052 = vsyncpa [#allocation5], 1 }

</bundles_post_ra>
